<compile_context>
chip_gen: v5e
topology: v5e:2x2
jax: 0.10.0
libtpu: 0.0.40
codegen_flags: <defaults>
</compile_context>

<pallas_src>
import functools

import jax
import jax.numpy as jnp
from jax.experimental import pallas as pl
from jax.experimental.pallas import tpu as pltpu


# ---------------------------------------------------------------------------
# Pallas kernel: hop loop + dense + (optional) softmax, one batch block per step
# ---------------------------------------------------------------------------
def _memnet_kernel(valid_len_ref,                 # scalar prefetch (SMEM): (1,) int32
                   memory_ref, aspect_ref,
                   wx_ref, bx_ref,                # x_linear
                   wk_ref, bk_ref,                # attention.w_k
                   w1_ref,                        # attention.weight[0]  (1, E)
                   vq_ref, cq_ref,                # folded w_q: (E,1), (1,1)
                   wp_ref, bp_ref,                # attention.proj
                   wd_ref, bd_ref,                # dense (padded to 128 lanes)
                   out_ref,
                   *, hops, apply_softmax):
    memory = memory_ref[...]                      # (Bt, L, E)
    x = aspect_ref[...]                           # (Bt, E)   (q_len == 1 squeezed)
    Bt, L, E = memory.shape

    wx = wx_ref[...]; bx = bx_ref[...]            # (E, E), (1, E)
    wk = wk_ref[...]; bk = bk_ref[...]
    wp = wp_ref[...]; bp = bp_ref[...]
    wd = wd_ref[...]; bd = bd_ref[...]            # (E, 128), (1, 128)
    w1 = w1_ref[...]                              # (1, E)
    vq = vq_ref[...]                              # (E, 1)
    cq = cq_ref[...]                              # (1, 1)

    # kx = w_k(memory): single dense 2-D matmul over the whole (Bt*L, E) slab.
    kx_flat = jnp.dot(memory.reshape(Bt * L, E), wk,
                      preferred_element_type=jnp.float32) + bk          # (Bt*L, E)
    kx = kx_flat.reshape(Bt, L, E)

    # Loop-invariant half of the MLP attention score (kx and w1 never change per hop).
    s_k = jnp.sum(kx * w1[None, :, :], axis=-1)                          # (Bt, L)

    # Positions >= batch-max length are exactly what SqueezeEmbedding truncates away
    # in torch; mask them out of the softmax instead of using a dynamic shape.
    pos = jax.lax.broadcasted_iota(jnp.int32, (Bt, L), 1)
    valid_mask = pos < valid_len_ref[0]                                  # (Bt, L)

    for _ in range(hops):
        # x = self.x_linear(x)
        x = jnp.dot(x, wx, preferred_element_type=jnp.float32) + bx      # (Bt, E)

        # Attention(memory, x), score_function='mlp', n_head=1:
        #   tanh(cat(kx, qx) @ weight) == tanh(kx @ w1^T + (x @ wq + bq) @ w2^T)
        #   with the w_q branch folded into v_q / c_q on the host.
        s_q = jnp.dot(x, vq, preferred_element_type=jnp.float32) + cq    # (Bt, 1)
        score = jnp.tanh(s_k + s_q)                                       # (Bt, L)
        score = jnp.where(valid_mask, score, -1e30)

        # softmax over the (squeezed) memory positions, exactly like torch
        score = score - jnp.max(score, axis=-1, keepdims=True)
        e = jnp.exp(score)
        attn = e * pl.reciprocal(jnp.sum(e, axis=-1, keepdims=True), approx=True)

        # output = bmm(score, kx)  ->  VPU multiply + sublane reduce (MXU would be ~1% utilized)
        out_at = jnp.sum(attn[:, :, None] * kx, axis=1)                   # (Bt, E)
        # proj; (Attention's dropout has p=0 -> identity)
        out_at = jnp.dot(out_at, wp, preferred_element_type=jnp.float32) + bp

        # residual
        x = out_at + x

    # out = self.dense(x)   (wd/bd padded to 128 lanes; padded lanes carry -1e30 bias)
    logits = jnp.dot(x, wd, preferred_element_type=jnp.float32) + bd      # (Bt, 128)
    if apply_softmax:
        logits = logits - jnp.max(logits, axis=-1, keepdims=True)
        el = jnp.exp(logits)
        logits = el * pl.reciprocal(jnp.sum(el, axis=-1, keepdims=True), approx=True)
    out_ref[...] = logits                                                  # lane-dense store


def memnet_pallas(memory, aspect_avg, valid_len, params, *,
                  hops, apply_softmax, block_b=8):
    B, L, E = memory.shape
    P = params['wd'].shape[1]
    P_PAD = 128
    assert B % block_b == 0, "batch must be a multiple of block_b"

    # ---- host-side algebraic folding / layout prep (done once per call) ----
    w1 = params['wmlp'][0:1, :]                        # (1, E)  multiplies kx
    w2 = params['wmlp'][1:2, :]                        # (1, E)  multiplies qx
    vq = params['wq'] @ w2.T                           # (E, 1)  folded w_q
    cq = params['bq'] @ w2.T                           # (1, 1)
    wd_pad = jnp.zeros((E, P_PAD), jnp.float32).at[:, :P].set(params['wd'])
    bd_pad = jnp.full((1, P_PAD), -1e30, jnp.float32).at[:, :P].set(params['bd'])
    valid_len = valid_len.reshape((1,)).astype(jnp.int32)

    def full(shape):
        return pl.BlockSpec(shape, lambda b, vl, _s=shape: (0,) * len(_s))

    grid_spec = pltpu.PrefetchScalarGridSpec(
        num_scalar_prefetch=1,
        grid=(B // block_b,),
        in_specs=[
            pl.BlockSpec((block_b, L, E), lambda b, vl: (b, 0, 0)),   # memory
            pl.BlockSpec((block_b, E),    lambda b, vl: (b, 0)),      # aspect_avg
            full((E, E)), full((1, E)),                               # wx, bx
            full((E, E)), full((1, E)),                               # wk, bk
            full((1, E)),                                             # w1
            full((E, 1)), full((1, 1)),                               # vq, cq
            full((E, E)), full((1, E)),                               # wp, bp
            full((E, P_PAD)), full((1, P_PAD)),                       # wd_pad, bd_pad
        ],
        out_specs=pl.BlockSpec((block_b, P_PAD), lambda b, vl: (b, 0)),
    )

    out_pad = pl.pallas_call(
        functools.partial(_memnet_kernel, hops=hops, apply_softmax=apply_softmax),
        out_shape=jax.ShapeDtypeStruct((B, P_PAD), jnp.float32),
        grid_spec=grid_spec,
        compiler_params=pltpu.CompilerParams(
            dimension_semantics=("parallel",)),
    )(valid_len, memory, aspect_avg,
      params['wx'], params['bx'], params['wk'], params['bk'],
      w1, vq, cq, params['wp'], params['bp'], wd_pad, bd_pad)
    return out_pad[:, :P]


# ---------------------------------------------------------------------------
# Pure-JAX reference (mirrors the torch forward) for correctness checking
# ---------------------------------------------------------------------------
def memnet_ref(memory, aspect_avg, valid_len, p, *, hops, apply_softmax):
    B, L, E = memory.shape
    kx = jnp.einsum('ble,eh->blh', memory, p['wk']) + p['bk'][None, :, :]
    w1, w2 = p['wmlp'][0], p['wmlp'][1]
    pos_ok = jnp.arange(L)[None, :] < valid_len        # == SqueezeEmbedding truncation
    x = aspect_avg
    for _ in range(hops):
        x = x @ p['wx'] + p['bx']
        qx = x @ p['wq'] + p['bq']
        score = jnp.tanh(jnp.sum(kx * w1, axis=-1) + jnp.sum(qx * w2, axis=-1)[:, None])
        score = jnp.where(pos_ok, score, -jnp.inf)
        attn = jax.nn.softmax(score, axis=-1)
        out_at = jnp.einsum('bl,ble->be', attn, kx) @ p['wp'] + p['bp']
        x = out_at + x
    out = x @ p['wd'] + p['bd']
    if apply_softmax:
        out = jax.nn.softmax(out, axis=-1)
    return out


# ---------------------------------------------------------------------------
# Driver
# ---------------------------------------------------------------------------
if __name__ == "__main__":
    # args
    EMBED_DIM = 32
    POLARITIES = 3
    HOPS = 3
    APPLY_SOFTMAX = True
    VOCAB = 20

    B = 16                       # sublane-full batch blocks; 2 blocks -> parallel grid
    BLOCK_B = 8
    L_TEXT, L_ASP, L_LEFT = 16, 8, 10   # fixed, sublane-aligned buckets

    key = jax.random.PRNGKey(0)
    keys = jax.random.split(key, 12)

    # ---- deterministic "pretrained" embedding + layer params -------------
    def linear_params(kw, kb, d_in, d_out):
        w = 0.1 * jax.random.normal(kw, (d_in, d_out), jnp.float32)   # stored (in, out)
        b = 0.1 * jax.random.normal(kb, (1, d_out), jnp.float32)
        return w, b

    embedding = 0.5 * jax.random.normal(keys[0], (VOCAB, EMBED_DIM), jnp.float32)
    wx, bx = linear_params(keys[1], keys[2], EMBED_DIM, EMBED_DIM)    # x_linear
    wk, bk = linear_params(keys[3], keys[4], EMBED_DIM, EMBED_DIM)    # attention.w_k
    wq, bq = linear_params(keys[5], keys[6], EMBED_DIM, EMBED_DIM)    # attention.w_q
    wp, bp = linear_params(keys[7], keys[8], EMBED_DIM, EMBED_DIM)    # attention.proj
    wd, bd = linear_params(keys[9], keys[10], EMBED_DIM, POLARITIES)  # dense
    wmlp = 0.1 * jax.random.normal(keys[11], (2, EMBED_DIM), jnp.float32)  # attention.weight
    params = dict(wx=wx, bx=bx, wk=wk, bk=bk, wq=wq, bq=bq,
                  wmlp=wmlp, wp=wp, bp=bp, wd=wd, bd=bd)

    # ---- deterministic token inputs (0 == pad) ----------------------------
    ik = jax.random.split(jax.random.PRNGKey(1), 6)
    text_lens = jax.random.randint(ik[3], (B,), 6, L_TEXT + 1)
    asp_lens  = jax.random.randint(ik[4], (B,), 1, L_ASP + 1)
    left_lens = jax.random.randint(ik[5], (B,), 1, L_LEFT + 1)

    def make_indices(k, shape, lengths):
        ids = jax.random.randint(k, shape, 1, VOCAB)
        mask = jnp.arange(shape[1])[None, :] < lengths[:, None]
        return jnp.where(mask, ids, 0).astype(jnp.int32)

    text_raw_without_aspect_indices = make_indices(ik[0], (B, L_TEXT), text_lens)
    aspect_indices = make_indices(ik[1], (B, L_ASP), asp_lens)
    left_with_aspect_indices = make_indices(ik[2], (B, L_LEFT), left_lens)

    # ---- glue (plain JAX): lengths, embedding lookup, SqueezeEmbedding, ----
    # ---- aspect mean. Fixed L bucket + batch-max scalar => no recompiles. --
    # TODO(synk): the embedding gather + length bookkeeping stay in XLA glue; a
    # Pallas gather kernel is not worthwhile at these sizes.
    left_len = jnp.sum(left_with_aspect_indices != 0, axis=-1)   # computed (unused in forward)
    memory_len = jnp.sum(text_raw_without_aspect_indices != 0, axis=-1)
    aspect_len = jnp.sum(aspect_indices != 0, axis=-1)

    mem_emb = embedding[text_raw_without_aspect_indices]            # (B, L_TEXT, E)
    # pad_packed_sequence in SqueezeEmbedding fills positions >= sample length with 0.0
    mem_mask = (jnp.arange(L_TEXT)[None, :] < memory_len[:, None]).astype(jnp.float32)
    memory = mem_emb * mem_mask[:, :, None]                         # fixed (B, L_TEXT, E)
    valid_len = jnp.max(memory_len).astype(jnp.int32).reshape((1,)) # SqueezeEmbedding batch max

    asp_emb = embedding[aspect_indices]                             # (B, L_ASP, E)
    asp_mask = (jnp.arange(L_ASP)[None, :] < aspect_len[:, None]).astype(jnp.float32)
    aspect_sum = jnp.sum(asp_emb * asp_mask[:, :, None], axis=1)    # (B, E)
    aspect_avg = aspect_sum / aspect_len[:, None].astype(jnp.float32)

    # NOTE: self.dropout is never applied in forward; Attention's dropout has p=0 (identity).

    # ---- run Pallas kernel -------------------------------------------------
    out = memnet_pallas(memory, aspect_avg, valid_len, params,
                        hops=HOPS, apply_softmax=APPLY_SOFTMAX, block_b=BLOCK_B)
    out = jax.block_until_ready(out)

    ref = memnet_ref(memory, aspect_avg, valid_len, params,
                     hops=HOPS, apply_softmax=APPLY_SOFTMAX)
    assert out.shape == (B, POLARITIES)
    # tolerance loosened slightly for the EUP approx reciprocals in both softmaxes
    assert jnp.allclose(out, ref, atol=5e-3, rtol=5e-3), (out, ref)
    print("KERNEL_OK")
</pallas_src>

<mosaic_0001>
module attributes {stable_mosaic.version = 11 : i64} {
  func.func @_memnet_kernel(%arg0: i32, %arg1: memref<1xi32, #tpu.memory_space<smem>>, %arg2: memref<8x16x32xf32, #tpu.memory_space<vmem>>, %arg3: memref<8x32xf32, #tpu.memory_space<vmem>>, %arg4: memref<32x32xf32, #tpu.memory_space<vmem>>, %arg5: memref<1x32xf32, #tpu.memory_space<vmem>>, %arg6: memref<32x32xf32, #tpu.memory_space<vmem>>, %arg7: memref<1x32xf32, #tpu.memory_space<vmem>>, %arg8: memref<1x32xf32, #tpu.memory_space<vmem>>, %arg9: memref<32x1xf32, #tpu.memory_space<vmem>>, %arg10: memref<1x1xf32, #tpu.memory_space<vmem>>, %arg11: memref<32x32xf32, #tpu.memory_space<vmem>>, %arg12: memref<1x32xf32, #tpu.memory_space<vmem>>, %arg13: memref<32x128xf32, #tpu.memory_space<vmem>>, %arg14: memref<1x128xf32, #tpu.memory_space<vmem>>, %arg15: memref<8x128xf32, #tpu.memory_space<vmem>>) attributes {dimension_semantics = [#tpu.dimension_semantics<parallel>], iteration_bounds = array<i64: 2>, scalar_prefetch = 1 : i64, scratch_operands = 0 : i64, tpu.core_type = #tpu.core_type<tc>, window_params = [{transform_indices = @transform_0, window_bounds = array<i64: 8, 16, 32>}, {transform_indices = @transform_1, window_bounds = array<i64: 8, 32>}, {pipeline_mode = #tpu.pipeline_mode<synchronous>, transform_indices = @transform_2, window_bounds = array<i64: 32, 32>}, {pipeline_mode = #tpu.pipeline_mode<synchronous>, transform_indices = @transform_3, window_bounds = array<i64: 1, 32>}, {pipeline_mode = #tpu.pipeline_mode<synchronous>, transform_indices = @transform_4, window_bounds = array<i64: 32, 32>}, {pipeline_mode = #tpu.pipeline_mode<synchronous>, transform_indices = @transform_5, window_bounds = array<i64: 1, 32>}, {pipeline_mode = #tpu.pipeline_mode<synchronous>, transform_indices = @transform_6, window_bounds = array<i64: 1, 32>}, {pipeline_mode = #tpu.pipeline_mode<synchronous>, transform_indices = @transform_7, window_bounds = array<i64: 32, 1>}, {pipeline_mode = #tpu.pipeline_mode<synchronous>, transform_indices = @transform_8, window_bounds = array<i64: 1, 1>}, {pipeline_mode = #tpu.pipeline_mode<synchronous>, transform_indices = @transform_9, window_bounds = array<i64: 32, 32>}, {pipeline_mode = #tpu.pipeline_mode<synchronous>, transform_indices = @transform_10, window_bounds = array<i64: 1, 32>}, {pipeline_mode = #tpu.pipeline_mode<synchronous>, transform_indices = @transform_11, window_bounds = array<i64: 32, 128>}, {pipeline_mode = #tpu.pipeline_mode<synchronous>, transform_indices = @transform_12, window_bounds = array<i64: 1, 128>}, {transform_indices = @transform_13, window_bounds = array<i64: 8, 128>}]} {
    %c0 = arith.constant 0 : index
    %c0_0 = arith.constant 0 : index
    %c0_1 = arith.constant 0 : index
    %0 = vector.load %arg2[%c0, %c0_0, %c0_1] : memref<8x16x32xf32, #tpu.memory_space<vmem>>, vector<8x16x32xf32>
    %c0_2 = arith.constant 0 : index
    %c0_3 = arith.constant 0 : index
    %1 = vector.load %arg3[%c0_2, %c0_3] : memref<8x32xf32, #tpu.memory_space<vmem>>, vector<8x32xf32>
    %c0_4 = arith.constant 0 : index
    %c0_5 = arith.constant 0 : index
    %2 = vector.load %arg4[%c0_4, %c0_5] : memref<32x32xf32, #tpu.memory_space<vmem>>, vector<32x32xf32>
    %c0_6 = arith.constant 0 : index
    %c0_7 = arith.constant 0 : index
    %3 = vector.load %arg5[%c0_6, %c0_7] : memref<1x32xf32, #tpu.memory_space<vmem>>, vector<1x32xf32>
    %c0_8 = arith.constant 0 : index
    %c0_9 = arith.constant 0 : index
    %4 = vector.load %arg6[%c0_8, %c0_9] : memref<32x32xf32, #tpu.memory_space<vmem>>, vector<32x32xf32>
    %c0_10 = arith.constant 0 : index
    %c0_11 = arith.constant 0 : index
    %5 = vector.load %arg7[%c0_10, %c0_11] : memref<1x32xf32, #tpu.memory_space<vmem>>, vector<1x32xf32>
    %c0_12 = arith.constant 0 : index
    %c0_13 = arith.constant 0 : index
    %6 = vector.load %arg11[%c0_12, %c0_13] : memref<32x32xf32, #tpu.memory_space<vmem>>, vector<32x32xf32>
    %c0_14 = arith.constant 0 : index
    %c0_15 = arith.constant 0 : index
    %7 = vector.load %arg12[%c0_14, %c0_15] : memref<1x32xf32, #tpu.memory_space<vmem>>, vector<1x32xf32>
    %c0_16 = arith.constant 0 : index
    %c0_17 = arith.constant 0 : index
    %8 = vector.load %arg13[%c0_16, %c0_17] : memref<32x128xf32, #tpu.memory_space<vmem>>, vector<32x128xf32>
    %c0_18 = arith.constant 0 : index
    %c0_19 = arith.constant 0 : index
    %9 = vector.load %arg14[%c0_18, %c0_19] : memref<1x128xf32, #tpu.memory_space<vmem>>, vector<1x128xf32>
    %c0_20 = arith.constant 0 : index
    %c0_21 = arith.constant 0 : index
    %10 = vector.load %arg8[%c0_20, %c0_21] : memref<1x32xf32, #tpu.memory_space<vmem>>, vector<1x32xf32>
    %c0_22 = arith.constant 0 : index
    %c0_23 = arith.constant 0 : index
    %11 = vector.load %arg9[%c0_22, %c0_23] : memref<32x1xf32, #tpu.memory_space<vmem>>, vector<32x1xf32>
    %c0_24 = arith.constant 0 : index
    %c0_25 = arith.constant 0 : index
    %12 = vector.load %arg10[%c0_24, %c0_25] : memref<1x1xf32, #tpu.memory_space<vmem>>, vector<1x1xf32>
    %13 = vector.shape_cast %0 : vector<8x16x32xf32> to vector<128x32xf32>
    %cst = arith.constant dense<0.000000e+00> : vector<128x32xf32>
    %14 = tpu.matmul %13, %4, %cst {dimension_numbers = #tpu.dot_dimension_numbers<[1], [0], [0], [1], [0, 0, 1, 1], [], []>} : vector<128x32xf32>, vector<32x32xf32>, vector<128x32xf32> -> vector<128x32xf32>
    %15 = vector.broadcast %5 : vector<1x32xf32> to vector<128x32xf32>
    %16 = arith.addf %14, %15 : vector<128x32xf32>
    %17 = vector.shape_cast %16 : vector<128x32xf32> to vector<8x16x32xf32>
    %18 = vector.shape_cast %10 : vector<1x32xf32> to vector<1x1x32xf32>
    %19 = vector.broadcast %18 : vector<1x1x32xf32> to vector<8x16x32xf32>
    %20 = arith.mulf %17, %19 : vector<8x16x32xf32>
    %cst_26 = arith.constant dense<0.000000e+00> : vector<8x16xf32>
    %21 = vector.multi_reduction <add>, %20, %cst_26 [2] : vector<8x16x32xf32> to vector<8x16xf32>
    %22 = tpu.iota {dimensions = array<i32: 1>} : vector<8x16xi32>
    %c0_27 = arith.constant 0 : index
    %23 = memref.load %arg1[%c0_27] : memref<1xi32, #tpu.memory_space<smem>>
    %24 = vector.broadcast %23 : i32 to vector<8x16xi32>
    %25 = arith.cmpi slt, %22, %24 : vector<8x16xi32>
    %cst_28 = arith.constant dense<0.000000e+00> : vector<8x32xf32>
    %26 = tpu.matmul %1, %2, %cst_28 {dimension_numbers = #tpu.dot_dimension_numbers<[1], [0], [0], [1], [0, 0, 1, 1], [], []>} : vector<8x32xf32>, vector<32x32xf32>, vector<8x32xf32> -> vector<8x32xf32>
    %27 = vector.broadcast %3 : vector<1x32xf32> to vector<8x32xf32>
    %28 = arith.addf %26, %27 : vector<8x32xf32>
    %cst_29 = arith.constant dense<0.000000e+00> : vector<8x1xf32>
    %29 = tpu.matmul %28, %11, %cst_29 {dimension_numbers = #tpu.dot_dimension_numbers<[1], [0], [0], [1], [0, 0, 1, 1], [], []>} : vector<8x32xf32>, vector<32x1xf32>, vector<8x1xf32> -> vector<8x1xf32>
    %30 = vector.broadcast %12 : vector<1x1xf32> to vector<8x1xf32>
    %31 = arith.addf %29, %30 : vector<8x1xf32>
    %32 = vector.broadcast %31 : vector<8x1xf32> to vector<8x16xf32>
    %33 = arith.addf %21, %32 : vector<8x16xf32>
    %34 = math.tanh %33 : vector<8x16xf32>
    %cst_30 = arith.constant -1.000000e+30 : f32
    %35 = vector.broadcast %cst_30 : f32 to vector<8x16xf32>
    %36 = arith.select %25, %34, %35 : vector<8x16xi1>, vector<8x16xf32>
    %cst_31 = arith.constant dense<0xFF800000> : vector<8xf32>
    %37 = vector.multi_reduction <maximumf>, %36, %cst_31 [1] : vector<8x16xf32> to vector<8xf32>
    %38 = vector.shape_cast %37 : vector<8xf32> to vector<8x1xf32>
    %39 = vector.broadcast %38 : vector<8x1xf32> to vector<8x16xf32>
    %40 = arith.subf %36, %39 : vector<8x16xf32>
    %41 = math.exp %40 : vector<8x16xf32>
    %cst_32 = arith.constant dense<0.000000e+00> : vector<8xf32>
    %42 = vector.multi_reduction <add>, %41, %cst_32 [1] : vector<8x16xf32> to vector<8xf32>
    %43 = vector.shape_cast %42 : vector<8xf32> to vector<8x1xf32>
    %44 = tpu.reciprocal %43 {approx = true} : vector<8x1xf32> -> vector<8x1xf32>
    %45 = vector.broadcast %44 : vector<8x1xf32> to vector<8x16xf32>
    %46 = arith.mulf %41, %45 : vector<8x16xf32>
    %47 = vector.shape_cast %46 : vector<8x16xf32> to vector<8x16x1xf32>
    %48 = vector.broadcast %47 : vector<8x16x1xf32> to vector<8x16x32xf32>
    %49 = arith.mulf %48, %17 : vector<8x16x32xf32>
    %cst_33 = arith.constant dense<0.000000e+00> : vector<8x32xf32>
    %50 = vector.multi_reduction <add>, %49, %cst_33 [1] : vector<8x16x32xf32> to vector<8x32xf32>
    %cst_34 = arith.constant dense<0.000000e+00> : vector<8x32xf32>
    %51 = tpu.matmul %50, %6, %cst_34 {dimension_numbers = #tpu.dot_dimension_numbers<[1], [0], [0], [1], [0, 0, 1, 1], [], []>} : vector<8x32xf32>, vector<32x32xf32>, vector<8x32xf32> -> vector<8x32xf32>
    %52 = vector.broadcast %7 : vector<1x32xf32> to vector<8x32xf32>
    %53 = arith.addf %51, %52 : vector<8x32xf32>
    %54 = arith.addf %53, %28 : vector<8x32xf32>
    %cst_35 = arith.constant dense<0.000000e+00> : vector<8x32xf32>
    %55 = tpu.matmul %54, %2, %cst_35 {dimension_numbers = #tpu.dot_dimension_numbers<[1], [0], [0], [1], [0, 0, 1, 1], [], []>} : vector<8x32xf32>, vector<32x32xf32>, vector<8x32xf32> -> vector<8x32xf32>
    %56 = vector.broadcast %3 : vector<1x32xf32> to vector<8x32xf32>
    %57 = arith.addf %55, %56 : vector<8x32xf32>
    %cst_36 = arith.constant dense<0.000000e+00> : vector<8x1xf32>
    %58 = tpu.matmul %57, %11, %cst_36 {dimension_numbers = #tpu.dot_dimension_numbers<[1], [0], [0], [1], [0, 0, 1, 1], [], []>} : vector<8x32xf32>, vector<32x1xf32>, vector<8x1xf32> -> vector<8x1xf32>
    %59 = vector.broadcast %12 : vector<1x1xf32> to vector<8x1xf32>
    %60 = arith.addf %58, %59 : vector<8x1xf32>
    %61 = vector.broadcast %60 : vector<8x1xf32> to vector<8x16xf32>
    %62 = arith.addf %21, %61 : vector<8x16xf32>
    %63 = math.tanh %62 : vector<8x16xf32>
    %cst_37 = arith.constant -1.000000e+30 : f32
    %64 = vector.broadcast %cst_37 : f32 to vector<8x16xf32>
    %65 = arith.select %25, %63, %64 : vector<8x16xi1>, vector<8x16xf32>
    %cst_38 = arith.constant dense<0xFF800000> : vector<8xf32>
    %66 = vector.multi_reduction <maximumf>, %65, %cst_38 [1] : vector<8x16xf32> to vector<8xf32>
    %67 = vector.shape_cast %66 : vector<8xf32> to vector<8x1xf32>
    %68 = vector.broadcast %67 : vector<8x1xf32> to vector<8x16xf32>
    %69 = arith.subf %65, %68 : vector<8x16xf32>
    %70 = math.exp %69 : vector<8x16xf32>
    %cst_39 = arith.constant dense<0.000000e+00> : vector<8xf32>
    %71 = vector.multi_reduction <add>, %70, %cst_39 [1] : vector<8x16xf32> to vector<8xf32>
    %72 = vector.shape_cast %71 : vector<8xf32> to vector<8x1xf32>
    %73 = tpu.reciprocal %72 {approx = true} : vector<8x1xf32> -> vector<8x1xf32>
    %74 = vector.broadcast %73 : vector<8x1xf32> to vector<8x16xf32>
    %75 = arith.mulf %70, %74 : vector<8x16xf32>
    %76 = vector.shape_cast %75 : vector<8x16xf32> to vector<8x16x1xf32>
    %77 = vector.broadcast %76 : vector<8x16x1xf32> to vector<8x16x32xf32>
    %78 = arith.mulf %77, %17 : vector<8x16x32xf32>
    %cst_40 = arith.constant dense<0.000000e+00> : vector<8x32xf32>
    %79 = vector.multi_reduction <add>, %78, %cst_40 [1] : vector<8x16x32xf32> to vector<8x32xf32>
    %cst_41 = arith.constant dense<0.000000e+00> : vector<8x32xf32>
    %80 = tpu.matmul %79, %6, %cst_41 {dimension_numbers = #tpu.dot_dimension_numbers<[1], [0], [0], [1], [0, 0, 1, 1], [], []>} : vector<8x32xf32>, vector<32x32xf32>, vector<8x32xf32> -> vector<8x32xf32>
    %81 = vector.broadcast %7 : vector<1x32xf32> to vector<8x32xf32>
    %82 = arith.addf %80, %81 : vector<8x32xf32>
    %83 = arith.addf %82, %57 : vector<8x32xf32>
    %cst_42 = arith.constant dense<0.000000e+00> : vector<8x32xf32>
    %84 = tpu.matmul %83, %2, %cst_42 {dimension_numbers = #tpu.dot_dimension_numbers<[1], [0], [0], [1], [0, 0, 1, 1], [], []>} : vector<8x32xf32>, vector<32x32xf32>, vector<8x32xf32> -> vector<8x32xf32>
    %85 = vector.broadcast %3 : vector<1x32xf32> to vector<8x32xf32>
    %86 = arith.addf %84, %85 : vector<8x32xf32>
    %cst_43 = arith.constant dense<0.000000e+00> : vector<8x1xf32>
    %87 = tpu.matmul %86, %11, %cst_43 {dimension_numbers = #tpu.dot_dimension_numbers<[1], [0], [0], [1], [0, 0, 1, 1], [], []>} : vector<8x32xf32>, vector<32x1xf32>, vector<8x1xf32> -> vector<8x1xf32>
    %88 = vector.broadcast %12 : vector<1x1xf32> to vector<8x1xf32>
    %89 = arith.addf %87, %88 : vector<8x1xf32>
    %90 = vector.broadcast %89 : vector<8x1xf32> to vector<8x16xf32>
    %91 = arith.addf %21, %90 : vector<8x16xf32>
    %92 = math.tanh %91 : vector<8x16xf32>
    %cst_44 = arith.constant -1.000000e+30 : f32
    %93 = vector.broadcast %cst_44 : f32 to vector<8x16xf32>
    %94 = arith.select %25, %92, %93 : vector<8x16xi1>, vector<8x16xf32>
    %cst_45 = arith.constant dense<0xFF800000> : vector<8xf32>
    %95 = vector.multi_reduction <maximumf>, %94, %cst_45 [1] : vector<8x16xf32> to vector<8xf32>
    %96 = vector.shape_cast %95 : vector<8xf32> to vector<8x1xf32>
    %97 = vector.broadcast %96 : vector<8x1xf32> to vector<8x16xf32>
    %98 = arith.subf %94, %97 : vector<8x16xf32>
    %99 = math.exp %98 : vector<8x16xf32>
    %cst_46 = arith.constant dense<0.000000e+00> : vector<8xf32>
    %100 = vector.multi_reduction <add>, %99, %cst_46 [1] : vector<8x16xf32> to vector<8xf32>
    %101 = vector.shape_cast %100 : vector<8xf32> to vector<8x1xf32>
    %102 = tpu.reciprocal %101 {approx = true} : vector<8x1xf32> -> vector<8x1xf32>
    %103 = vector.broadcast %102 : vector<8x1xf32> to vector<8x16xf32>
    %104 = arith.mulf %99, %103 : vector<8x16xf32>
    %105 = vector.shape_cast %104 : vector<8x16xf32> to vector<8x16x1xf32>
    %106 = vector.broadcast %105 : vector<8x16x1xf32> to vector<8x16x32xf32>
    %107 = arith.mulf %106, %17 : vector<8x16x32xf32>
    %cst_47 = arith.constant dense<0.000000e+00> : vector<8x32xf32>
    %108 = vector.multi_reduction <add>, %107, %cst_47 [1] : vector<8x16x32xf32> to vector<8x32xf32>
    %cst_48 = arith.constant dense<0.000000e+00> : vector<8x32xf32>
    %109 = tpu.matmul %108, %6, %cst_48 {dimension_numbers = #tpu.dot_dimension_numbers<[1], [0], [0], [1], [0, 0, 1, 1], [], []>} : vector<8x32xf32>, vector<32x32xf32>, vector<8x32xf32> -> vector<8x32xf32>
    %110 = vector.broadcast %7 : vector<1x32xf32> to vector<8x32xf32>
    %111 = arith.addf %109, %110 : vector<8x32xf32>
    %112 = arith.addf %111, %86 : vector<8x32xf32>
    %cst_49 = arith.constant dense<0.000000e+00> : vector<8x128xf32>
    %113 = tpu.matmul %112, %8, %cst_49 {dimension_numbers = #tpu.dot_dimension_numbers<[1], [0], [0], [1], [0, 0, 1, 1], [], []>} : vector<8x32xf32>, vector<32x128xf32>, vector<8x128xf32> -> vector<8x128xf32>
    %114 = vector.broadcast %9 : vector<1x128xf32> to vector<8x128xf32>
    %115 = arith.addf %113, %114 : vector<8x128xf32>
    %cst_50 = arith.constant dense<0xFF800000> : vector<8xf32>
    %116 = vector.multi_reduction <maximumf>, %115, %cst_50 [1] : vector<8x128xf32> to vector<8xf32>
    %117 = vector.shape_cast %116 : vector<8xf32> to vector<8x1xf32>
    %118 = vector.broadcast %117 : vector<8x1xf32> to vector<8x128xf32>
    %119 = arith.subf %115, %118 : vector<8x128xf32>
    %120 = math.exp %119 : vector<8x128xf32>
    %cst_51 = arith.constant dense<0.000000e+00> : vector<8xf32>
    %121 = vector.multi_reduction <add>, %120, %cst_51 [1] : vector<8x128xf32> to vector<8xf32>
    %122 = vector.shape_cast %121 : vector<8xf32> to vector<8x1xf32>
    %123 = tpu.reciprocal %122 {approx = true} : vector<8x1xf32> -> vector<8x1xf32>
    %124 = vector.broadcast %123 : vector<8x1xf32> to vector<8x128xf32>
    %125 = arith.mulf %120, %124 : vector<8x128xf32>
    %c0_52 = arith.constant 0 : index
    %c0_53 = arith.constant 0 : index
    %126 = vector.load %arg15[%c0_52, %c0_53] : memref<8x128xf32, #tpu.memory_space<vmem>>, vector<8x128xf32>
    tpu.vector_store %arg15[%c0_52, %c0_53], %125 {strides = array<i32>} : memref<8x128xf32, #tpu.memory_space<vmem>>, vector<8x128xf32>,
    return
  }
  func.func @transform_0(%arg0: i32, %arg1: memref<1xi32, #tpu.memory_space<smem>>) -> (i32, i32, i32) {
    %c0_i32 = arith.constant 0 : i32
    %c0_i32_0 = arith.constant 0 : i32
    %c0_i32_1 = arith.constant 0 : i32
    return %arg0, %c0_i32, %c0_i32_0 : i32, i32, i32
  }
  func.func @transform_1(%arg0: i32, %arg1: memref<1xi32, #tpu.memory_space<smem>>) -> (i32, i32) {
    %c0_i32 = arith.constant 0 : i32
    %c0_i32_0 = arith.constant 0 : i32
    return %arg0, %c0_i32 : i32, i32
  }
  func.func @transform_2(%arg0: i32, %arg1: memref<1xi32, #tpu.memory_space<smem>>) -> (i32, i32) {
    %c0_i32 = arith.constant 0 : i32
    %c0_i32_0 = arith.constant 0 : i32
    %c0_i32_1 = arith.constant 0 : i32
    return %c0_i32, %c0_i32_0 : i32, i32
  }
  func.func @transform_3(%arg0: i32, %arg1: memref<1xi32, #tpu.memory_space<smem>>) -> (i32, i32) {
    %c0_i32 = arith.constant 0 : i32
    %c0_i32_0 = arith.constant 0 : i32
    %c0_i32_1 = arith.constant 0 : i32
    return %c0_i32, %c0_i32_0 : i32, i32
  }
  func.func @transform_4(%arg0: i32, %arg1: memref<1xi32, #tpu.memory_space<smem>>) -> (i32, i32) {
    %c0_i32 = arith.constant 0 : i32
    %c0_i32_0 = arith.constant 0 : i32
    %c0_i32_1 = arith.constant 0 : i32
    return %c0_i32, %c0_i32_0 : i32, i32
  }
  func.func @transform_5(%arg0: i32, %arg1: memref<1xi32, #tpu.memory_space<smem>>) -> (i32, i32) {
    %c0_i32 = arith.constant 0 : i32
    %c0_i32_0 = arith.constant 0 : i32
    %c0_i32_1 = arith.constant 0 : i32
    return %c0_i32, %c0_i32_0 : i32, i32
  }
  func.func @transform_6(%arg0: i32, %arg1: memref<1xi32, #tpu.memory_space<smem>>) -> (i32, i32) {
    %c0_i32 = arith.constant 0 : i32
    %c0_i32_0 = arith.constant 0 : i32
    %c0_i32_1 = arith.constant 0 : i32
    return %c0_i32, %c0_i32_0 : i32, i32
  }
  func.func @transform_7(%arg0: i32, %arg1: memref<1xi32, #tpu.memory_space<smem>>) -> (i32, i32) {
    %c0_i32 = arith.constant 0 : i32
    %c0_i32_0 = arith.constant 0 : i32
    %c0_i32_1 = arith.constant 0 : i32
    return %c0_i32, %c0_i32_0 : i32, i32
  }
  func.func @transform_8(%arg0: i32, %arg1: memref<1xi32, #tpu.memory_space<smem>>) -> (i32, i32) {
    %c0_i32 = arith.constant 0 : i32
    %c0_i32_0 = arith.constant 0 : i32
    %c0_i32_1 = arith.constant 0 : i32
    return %c0_i32, %c0_i32_0 : i32, i32
  }
  func.func @transform_9(%arg0: i32, %arg1: memref<1xi32, #tpu.memory_space<smem>>) -> (i32, i32) {
    %c0_i32 = arith.constant 0 : i32
    %c0_i32_0 = arith.constant 0 : i32
    %c0_i32_1 = arith.constant 0 : i32
    return %c0_i32, %c0_i32_0 : i32, i32
  }
  func.func @transform_10(%arg0: i32, %arg1: memref<1xi32, #tpu.memory_space<smem>>) -> (i32, i32) {
    %c0_i32 = arith.constant 0 : i32
    %c0_i32_0 = arith.constant 0 : i32
    %c0_i32_1 = arith.constant 0 : i32
    return %c0_i32, %c0_i32_0 : i32, i32
  }
  func.func @transform_11(%arg0: i32, %arg1: memref<1xi32, #tpu.memory_space<smem>>) -> (i32, i32) {
    %c0_i32 = arith.constant 0 : i32
    %c0_i32_0 = arith.constant 0 : i32
    %c0_i32_1 = arith.constant 0 : i32
    return %c0_i32, %c0_i32_0 : i32, i32
  }
  func.func @transform_12(%arg0: i32, %arg1: memref<1xi32, #tpu.memory_space<smem>>) -> (i32, i32) {
    %c0_i32 = arith.constant 0 : i32
    %c0_i32_0 = arith.constant 0 : i32
    %c0_i32_1 = arith.constant 0 : i32
    return %c0_i32, %c0_i32_0 : i32, i32
  }
  func.func @transform_13(%arg0: i32, %arg1: memref<1xi32, #tpu.memory_space<smem>>) -> (i32, i32) {
    %c0_i32 = arith.constant 0 : i32
    %c0_i32_0 = arith.constant 0 : i32
    return %arg0, %c0_i32 : i32, i32
  }
}

</mosaic_0001>

<bundles_post_ra>
// kernel: tpu_custom_call.1
= control target key start
LH: loop header
LB: loop body
LE: loop exit
PB: predicated region body
PF: predicated region fallthrough
CT: control target
= control target key end

     0   :  { %s3773_s0 = inlined_call_operand.<no memory space> [shape: s32[1], index: 0, kind: input, shape index: {}]   ;;  %s3774_s1 = inlined_call_operand.hbm [shape: f32[16,16,32], index: 1, kind: input, shape index: {}]   ;;  %s3775_s2 = inlined_call_operand.hbm [shape: f32[16,32], index: 2, kind: input, shape index: {}]   ;;  %s3776_s3 = inlined_call_operand.vmem [shape: f32[32,32], index: 3, kind: input, shape index: {}]   ;;  %s3777_s4 = inlined_call_operand.vmem [shape: f32[1,32], index: 4, kind: input, shape index: {}]   ;;  %s3778_s5 = inlined_call_operand.hbm [shape: f32[32,32], index: 5, kind: input, shape index: {}]   ;;  %s3779_s6 = inlined_call_operand.vmem [shape: f32[1,32], index: 6, kind: input, shape index: {}]   ;;  %s3780_s7 = inlined_call_operand.vmem [shape: f32[1,32], index: 7, kind: input, shape index: {}]   ;;  %s3781_s8 = inlined_call_operand.vmem [shape: f32[32,1], index: 8, kind: input, shape index: {}]   ;;  %s3782_s9 = inlined_call_operand.<no memory space> [shape: f32[1,1], index: 9, kind: input, shape index: {}]   ;;  %s3783_s10 = inlined_call_operand.hbm [shape: f32[32,32], index: 10, kind: input, shape index: {}]   ;;  %s3784_s11 = inlined_call_operand.vmem [shape: f32[1,32], index: 11, kind: input, shape index: {}]   ;;  %s3785_s12 = inlined_call_operand.hbm [shape: f32[32,128], index: 12, kind: input, shape index: {}]   ;;  %s3786_s13 = inlined_call_operand.vmem [shape: f32[1,128], index: 13, kind: input, shape index: {}]   ;;  %s3787_s14 = inlined_call_operand.hbm [shape: f32[16,128], index: 14, kind: output, shape index: {}]  }
   0x1   :  { %3822 = sst [smem:[#allocation37_spill]] %s3778_s5  ;;  %v20_v0 = vstv %s3782_s9 }
   0x2   :  { %3823 = sst [smem:[#allocation38_spill]] %s3783_s10  ;;  %21 = vst [vmem:[#allocation4] sm:$0x1] %v20_v0 }
   0x3   :  { %3824 = sst [smem:[#allocation39_spill]] %s3785_s12 }
   0x4   :  { %3825 = sst [smem:[#allocation40_spill]] %s3786_s13 }
   0x5   :  { %3826 = sst [smem:[#allocation41_spill]] %s3787_s14 }
   0x6   :  { %19 = sst [smem:[#allocation3]] %s3773_s0 }
   0x7   :  { %22 = vsyncpa [#allocation6], 0 }
   0x8   :  { %24 = vsyncpa [#allocation6 + $0x1], 0 }
   0x9   :  { %25 = vsyncpa [#allocation9], 0 }
   0xa   :  { %27 = vsyncpa [#allocation9 + $0x1], 0 }
   0xb   :  { %28 = vsyncpa [#allocation12], 0 }
   0xc   :  { %29 = vsyncpa [#allocation7], 0 }
   0xd   :  { %31 = vsyncpa [#allocation7 + $0x1], 0  ;;  %s2917_s17 = smov 0   ;;  %s2919_s18 = smov 0  }
   0xe   :  { %s2921_s19 = smov 0   ;;  %s2923_s20 = smov 0  }
   0xf LB: > { %3827 = sst [smem:[#allocation20_spill]] %s2816_s17  ;;  %s2938_s0 = sadd.s32 4294967295, %s2828_s20   ;;  %s2828_s20 = sphi %s2923_s20, %s3881_s20   ;;  %s2824_s19 = sphi %s2921_s19, %s3883_s19   ;;  %s2820_s18 = sphi %s2919_s18, %s3885_s18   ;;  %s2816_s17 = sphi %s2917_s17, %s3884_s17  }
  0x10   : > { %3828 = sst [smem:[#allocation21_spill]] %s2824_s19  ;;  %s2287_s9 = sadd.s32 4294967294, %s2828_s20  }
  0x11   : > { %p57_p0 = scmp.ne.s32.totalorder %s2820_s18, %s2816_s17  ;;  %p58_p1 = scmp.eq.s32.totalorder %s2938_s0, 0 }
  0x12   : > { %p338_p2 = scmp.eq.s32.totalorder %s2938_s0, 1  ;;  %p344_p3 = scmp.eq.s32.totalorder %s2287_s9, 1 }
  0x13   : > { %p2947_p4 = por %p58_p1, %p57_p0  ;;  %p2288_p5 = scmp.ge.s32.totalorder %s2828_s20, 1 }
  0x14   : > { %p2952_p6 = por %p344_p3, %p57_p0  ;;  %p351_p7 = scmp.lt.s32.totalorder %s2828_s20, 3 }
  0x15   : > { %s3832_s5 = sld [smem:[#allocation37_spill]]  ;;  %s2830_s27 = smov [#allocation10]  }
  0x16   : > { %s3830_s22 = scalar_select %p2952_p6, 1, 0 }
  0x17   : > { %p2960_p8 = pnand %p2288_p5, %p351_p7  ;;  %s370_s28 = sshll.u32 %s2830_s27, 4  ;;  %s371_s28 = int_to_ptr.vmem [resolvable:$true] %s370_s28 }
  0x18   : > { %3831 = sst [smem:[#allocation22_spill]] %s3830_s22  ;;  %s3788_s9 = smov 128  }
  0x19   : > { %p2368_p9 = pneg %p2960_p8  ;;  %s3835_s10 = sld [smem:[#allocation38_spill]] }
  0x1a   : > { %s3789_s23 = smov 8   ;;  %s2833_s24 = smov [#allocation11]  }
  0x1b   : > { %s368_s25 = sshll.u32 %s3832_s5, 4  ;;  %p2968_p10 = pnand %p2368_p9, %p58_p1  ;;  %s369_s25 = int_to_ptr.hbm [resolvable:$true] %s368_s25 }
  0x1c   : > { %s396_s27 = sshll.u32 %s2833_s24, 4  ;;  %s3836_s12 = sld [smem:[#allocation39_spill]]  ;;  %s397_s27 = int_to_ptr.vmem [resolvable:$true] %s396_s27 }
  0x1d   : > { %2371 = dma.hbm_to_vmem [thread:$0]  (!%p2968_p10), %s369_s25, 512, %s371_s28, [#allocation9], %s3788_s9, %s3788_s9, %s3789_s23  }
  0x1e   : > { %s2834_s25 = smov [#allocation13]   ;;  %s44_s24 = sadd.s32 1, %s2824_s19 }
  0x1f   : > { %s394_s16 = sshll.u32 %s3835_s10, 4  ;;  %s413_s28 = sshll.u32 %s2834_s25, 4  ;;  %s395_s16 = int_to_ptr.hbm [resolvable:$true] %s394_s16  ;;  %s414_s28 = int_to_ptr.vmem [resolvable:$true] %s413_s28 }
  0x20   : > { %2374 = dma.hbm_to_vmem [thread:$0]  (!%p2968_p10), %s395_s16, 512, %s397_s27, [#allocation12], %s3788_s9, %s3788_s9, %s3789_s23  }
  0x21   : > { %s2990_s10 = sadd.s32 1, %s2828_s20   ;;  %p51_p13 = scmp.ne.s32.totalorder %s2824_s19, %s2820_s18 }
  0x22   : > { %s411_s15 = sshll.u32 %s3836_s12, 4  ;;  %3837 = sst [smem:[#allocation23_spill]] %s2990_s10  ;;  %s412_s15 = int_to_ptr.hbm [resolvable:$true] %s411_s15 }
  0x23   : > { %2377 = dma.hbm_to_vmem [thread:$0]  (!%p2968_p10), %s412_s15, 512, %s414_s28, [#allocation12], %s3788_s9, %s3788_s9, %s3789_s23  }
  0x24   : > { %s41_s5 = ssub.s32 %s2828_s20, %s2990_s10  ;;  %p52_p0 = scmp.eq.s32.totalorder %s2828_s20, 0 }
  0x25   : > { %p42_p12 = scmp.eq.s32.totalorder %s41_s5, 0  ;;  %p2392_p3 = scmp.lt.s32.totalorder %s2828_s20, 2 }
  0x26   : > { %p53_p5 = por %p52_p0, %p51_p13  ;;  %p3009_p7 = por %p338_p2, %p51_p13 }
  0x27   : > { %s3005_s16 = scalar_select %p42_p12, %s2824_s19, %s44_s24  }
  0x28   : > { %s3839_s27 = scalar_select %p3009_p7, 1, 0 }
  0x29   : > { %3838 = sst [smem:[#allocation24_spill]] %s3005_s16  ;;  %s3014_s29 = sand.u32 1, %s2824_s19  }
  0x2a   : > { %3840 = sst [smem:[#allocation25_spill]] %s3839_s27  ;;  %s2337_s30 = sshll.u32 %s2828_s20, 7 }
  0x2b   : > { %s2293_s15 = sshll.u32 %s3014_s29, 7  ;;  %s440_s5 = scalar_lea.hbm %s3774_s1, %s2337_s30 }
  0x2c   : > { %s441_s9 = sshll.u32 %s440_s5, 4  ;;  %s434_s24 = scalar_lea.vmem [#allocation5], %s2293_s15  ;;  %s442_s9 = int_to_ptr.hbm [resolvable:$true] %s441_s9 }
  0x2d   : > { %s443_s23 = sshll.u32 %s434_s24, 4  ;;  %p3023_p2 = pnand %p2392_p3, %p53_p5  ;;  %s444_s23 = int_to_ptr.vmem [resolvable:$true] %s443_s23 }
  0x2e   : > { %s453_s16 = sand.u32 1, %s2828_s20   ;;  %s2297_s19 = sshll.u32 %s3014_s29, 3 }
  0x2f   : > { %s431_s10 = scalar_lea.sflag [#allocation6], %s3014_s29  ;;  %s2690_s22 = sshra.s32 %s442_s9, 4  ;;  %s2691_s22 = int_to_ptr.hbm [resolvable:$true] %s2690_s22 }
  0x30   : > { %s2692_s17 = scalar_lea.hbm %s2691_s22, 128  ;;  %p2694_p10 = pneg %p3023_p2 }
  0x31   : > { %p2693_p9 = scmp.ne.s32.totalorder %s2691_s22, %s2692_s17  ;;  %s2697_s25 = scalar_lea.hbm %s3774_s1, 256 }
  0x32   : > { %p2698_p0 = scmp.lt.s32.totalorder %s2691_s22, %s3774_s1  ;;  %p2699_p3 = scmp.lt.s32.totalorder %s2697_s25, %s2692_s17 }
  0x33   : > { %p2695_p12 = pnand %p2694_p10, %p2693_p9 }
  0x34   : > { %p2700_p5 = por %p2699_p3, %p2698_p0 }
  0x35   : > { %p2696_p13 = pneg %p2695_p12 }
  0x37   : > { %p2701_p11 = pnand %p2700_p5, %p2696_p13 }
  0x39   : > { %2704 = shalt.err (!%p2701_p11)
}
  0x3a   : > { %s3842_s29 = smov 8   ;;  %s3843_s24 = smov 128  }
  0x3b   : > { %2381 = dma.hbm_to_vmem [thread:$0]  (!%p3023_p2), %s442_s9, 2048, %s444_s23, %s431_s10, %s3843_s24, %s3843_s24, %s3842_s29  }
  0x3c   : > { %s2298_s14 = sshll.u32 %s2828_s20, 3  ;;  %s457_s27 = scalar_lea.vmem [#allocation8], %s2297_s19 }
  0x3d   : > { %s465_s30 = sshll.u32 %s457_s27, 4  ;;  %s461_s28 = scalar_lea.hbm %s3775_s2, %s2298_s14  ;;  %s466_s30 = int_to_ptr.vmem [resolvable:$true] %s465_s30 }
  0x3e   : > { %s463_s17 = sshll.u32 %s461_s28, 4  ;;  %s454_s22 = scalar_lea.sflag [#allocation9], %s453_s16  ;;  %s464_s17 = int_to_ptr.hbm [resolvable:$true] %s463_s17 }
  0x3f   : > { %s2720_s25 = sshra.s32 %s464_s17, 4  ;;  %s2727_s19 = scalar_lea.hbm %s3775_s2, 16  ;;  %s2721_s25 = int_to_ptr.hbm [resolvable:$true] %s2720_s25 }
  0x40   : > { %s2722_s5 = scalar_lea.hbm %s2721_s25, 8  ;;  %p2728_p13 = scmp.lt.s32.totalorder %s2721_s25, %s3775_s2 }
  0x41   : > { %p2723_p11 = scmp.ne.s32.totalorder %s2721_s25, %s2722_s5  ;;  %p2729_p0 = scmp.lt.s32.totalorder %s2727_s19, %s2722_s5 }
  0x43   : > { %p2725_p9 = pnand %p2723_p11, %p2694_p10  ;;  %p2730_p3 = por %p2729_p0, %p2728_p13 }
  0x45   : > { %p2726_p12 = pneg %p2725_p9 }
  0x47   : > { %p2731_p5 = pnand %p2730_p3, %p2726_p12 }
  0x49   : > { %2734 = shalt.err (!%p2731_p5)
}
  0x4a   : > { %2384 = dma.hbm_to_vmem [thread:$0]  (!%p3023_p2), %s464_s17, 128, %s466_s30, %s454_s22  }
  0x4b   : > { %474 = sbr.rel (%p2960_p8) target bundleno = 3981 (0xf8d), region = 72 }
  0x50   : > { %s3064_s13 = sand.u32 1, %s2820_s18  }
  0x51   : > { %s2300_s14 = sshll.u32 %s3064_s13, 7  ;;  %s477_s16 = scalar_lea.sflag [#allocation6], %s3064_s13 }
  0x52   : > { %s3068_s29 = scalar_lea.vmem [#allocation5], %s2300_s14 }
  0x53   : > { %2795 = dma.done.wait (%p2947_p4), %s477_s16, 2048  }
  0x54   : > { %2797 = vsyncadd (%p2947_p4), %s477_s16, 4294965248  ;;  %s486_s12 = sand.u32 1, %s2938_s0   ;;  %s2301_s26 = sshll.u32 %s3064_s13, 3 }
  0x55   : > { %s487_s24 = scalar_lea.sflag [#allocation9], %s486_s12  ;;  %s3078_s30 = scalar_lea.vmem [#allocation8], %s2301_s26 }
  0x56   : > { %2799 = dma.done.wait (%p2947_p4), %s487_s24, 128  }
  0x57   : > { %2801 = vsyncadd (%p2947_p4), %s487_s24, 4294967168 }
  0x58   : > { %2803 = dma.done.wait (%p58_p1), [#allocation9], 512  }
  0x59   : > { %2805 = vsyncadd (%p58_p1), [#allocation9], 4294966784 }
  0x5a   : > { %2807 = dma.done.wait (%p58_p1), [#allocation12], 1024  }
  0x5b   : > { %2809 = vsyncadd (%p58_p1), [#allocation12], 4294966272  ;;  %v580_v1 = vld [vmem:[#allocation10 + $0x18] sm:$0xff]  ;;  %v579_v2 = vld [vmem:[#allocation10 + $0x10] sm:$0xff]  ;;  %vm601_vm0 = vcmask 261120   ;;  %vm958_vm1 = vcmask 130112  }
  0x5c   : > { %2338 = vmatpush.msra.mxu1 %v580_v1  ;;  %2339 = vmatpush.msra.mxu2 %v580_v1  ;;  %v578_v3 = vld [vmem:[#allocation10 + $0x8] sm:$0xff]  ;;  %v577_v4 = vld [vmem:[#allocation10] sm:$0xff]  ;;  %v563_v6 = vld [vmem:[%s3068_s29 + $0x40] sm:$0xff]  ;;  %vm981_vm2 = vcmask 1041409   ;;  %s3358_s22 = sld [smem:[#allocation3]]  ;;  %vm983_vm3 = vcmask 1042434  }
  0x5d   : > { %662 = vmatpush.msra.mxu0 %v580_v1  ;;  %2340 = vmatpush.msra.mxu3 %v580_v1  ;;  %v562_v5 = vld [vmem:[%s3068_s29 + $0x38] sm:$0xff]  ;;  %v574_v8 = vld [vmem:[%s3776_s3 + $0x10] sm:$0xff]  ;;  %v555_v9 = vld [vmem:[%s3068_s29] sm:$0xff]  ;;  %vm985_vm4 = vcmask 1043459   ;;  %vm987_vm5 = vcmask 1044484   ;;  %vm989_vm6 = vcmask 1045509  }
  0x5e   : > { %2341 = vmatpush.msra.mxu1 %v579_v2  ;;  %2342 = vmatpush.msra.mxu2 %v579_v2  ;;  %v575_v7 = vld [vmem:[%s3776_s3 + $0x18] sm:$0xff]  ;;  %v567_v10 = vld [vmem:[%s3068_s29 + $0x60] sm:$0xff]  ;;  %v3117_v13 = vld [vmem:[%s3781_s8 + $0x10] sm:$0xff]  ;;  %vm991_vm7 = vcmask 1046534   ;;  %vm993_vm8 = vcmask 1047559   ;;  %vm997_vm10 = vcmask 130048  }
  0x5f   : > { %663 = vmatpush.msra.mxu0 %v579_v2  ;;  %2343 = vmatpush.msra.mxu3 %v579_v2  ;;  %v3105_v11 = vld [vmem:[%s3781_s8 + $0x18] sm:$0xff]  ;;  %v573_v12 = vld [vmem:[%s3776_s3 + $0x8] sm:$0xff]  ;;  %v572_v14 = vld [vmem:[%s3776_s3] sm:$0xff]  ;;  %s3875_s16 = sld [smem:[#allocation40_spill]]  ;;  %s2333_s12 = sshll.u32 %s2938_s0, 3 }
  0x60   : > { %2344 = vmatpush.msra.mxu1 %v578_v3  ;;  %2345 = vmatpush.msra.mxu2 %v578_v3  ;;  %v571_v15 = vld [vmem:[%s3078_s30] sm:$0xff]  ;;  %v565_v20 = vld [vmem:[%s3068_s29 + $0x50] sm:$0xff]  ;;  %v558_v23 = vld [vmem:[%s3068_s29 + $0x18] sm:$0xff]  ;;  %s3877_s15 = sld [smem:[#allocation41_spill]]  ;;  %s2151_s25 = scalar_lea.sflag [#allocation7], %s3064_s13 }
  0x61   : > { %664 = vmatpush.msra.mxu0 %v578_v3  ;;  %2346 = vmatpush.msra.mxu3 %v578_v3  ;;  %v564_v16 = vld [vmem:[%s3068_s29 + $0x48] sm:$0xff]  ;;  %v557_v21 = vld [vmem:[%s3068_s29 + $0x10] sm:$0xff]  ;;  %v559_v24 = vld [vmem:[%s3068_s29 + $0x20] sm:$0xff] }
  0x62   : > { %2347 = vmatpush.msra.mxu1 %v577_v4  ;;  %2348 = vmatpush.msra.mxu2 %v577_v4  ;;  %v3129_v17 = vld [vmem:[%s3781_s8 + $0x8] sm:$0xff]  ;;  %v569_v22 = vld [vmem:[%s3068_s29 + $0x70] sm:$0xff]  ;;  %v566_v25 = vld [vmem:[%s3068_s29 + $0x58] sm:$0xff] }
  0x63   : > { %2313 = vmatmul.msk.f32.vlgmr.msra.gmra.mxu1 %vm601_vm0, %v562_v5  ;;  %2314 = vmatmul.msk.f32.vlgmr.msra.gmra.mxu2 %vm601_vm0, %v563_v6  ;;  %v556_v18 = vld [vmem:[%s3068_s29 + $0x8] sm:$0xff]  ;;  %v593_v26 = vld [vmem:[%s3781_s8] sm:$0xff]  ;;  %v561_v29 = vld [vmem:[%s3068_s29 + $0x30] sm:$0xff] }
  0x64   : > { %805 = vmatpush.msrb.mxu1 %v575_v7  ;;  %665 = vmatpush.msra.mxu0 %v577_v4  ;;  %v568_v19 = vld [vmem:[%s3068_s29 + $0x68] sm:$0xff]  ;;  %v570_v28 = vld [vmem:[%s3068_s29 + $0x78] sm:$0xff] }
  0x65   : > { %2306 = vmatmul.msk.f32.vlgmr.msra.gmra.mxu0 %vm601_vm0, %v555_v9  ;;  %2349 = vmatpush.msra.mxu3 %v577_v4  ;;  %v560_v27 = vld [vmem:[%s3068_s29 + $0x28] sm:$0xff]  ;;  %v3165_v30 = vld [vmem:[%s3779_s6] ss:$0 sm:$0xff]  ;;  %s553_s29 = scalar_lea.vmem [#allocation14], %s2301_s26 }
  0x66   : > { %806 = vmatpush.msrb.mxu1 %v574_v8  ;;  %2318 = vmatmul.msk.f32.vlgmr.msra.gmra.mxu3 %vm601_vm0, %v567_v10  ;;  %v3170_v31 = vld [vmem:[%s3780_s7] ss:$0 sm:$0xff]  ;;  %s2161_s28 = scalar_lea.hbm %s3877_s15, %s2333_s12  ;;  %s2163_s17 = sshll.u32 %s553_s29, 4  ;;  %s2164_s17 = int_to_ptr.vmem [resolvable:$true] %s2163_s17 }
  0x67   : > { %831 = vmatpush.msrb.mxu2 %v3105_v11  ;;  %v3184_v38 = vld [vmem:[%s3777_s4] ss:$0 sm:$0xff]  ;;  %s2770_s19 = scalar_lea.hbm %s3877_s15, 16 }
  0x68   : > { %807 = vmatpush.msrb.mxu1 %v573_v12 }
  0x69   : > { %832 = vmatpush.msrb.mxu2 %v3117_v13 }
  0x6a   : > { %808 = vmatpush.msrb.mxu1 %v572_v14 }
  0x6b   : > { %2322 = vmatmul.msk.f32.vlgmr.msrb.gmra.mxu1 %vm601_vm0, %v571_v15  ;;  %2315 = vmatmul.msk.f32.gmra.mxu2 %vm601_vm0, %v564_v16 }
  0x6c   : > { %833 = vmatpush.msrb.mxu2 %v3129_v17  ;;  %1257 = vmatpush.msra.mxu1 %v575_v7 }
  0x6d   : > { %2307 = vmatmul.msk.f32.gmra.mxu0 %vm601_vm0, %v556_v18 }
  0x6e   : > { %2319 = vmatmul.msk.f32.gmra.mxu3 %vm601_vm0, %v568_v19  ;;  %1258 = vmatpush.msra.mxu1 %v574_v8 }
  0x6f   : > { %834 = vmatpush.msrb.mxu2 %v593_v26 }
  0x70   : > { %1259 = vmatpush.msra.mxu1 %v573_v12 }
  0x71   : > { %1280 = vmatpush.msra.mxu2 %v3105_v11 }
  0x72   : > { %1260 = vmatpush.msra.mxu1 %v572_v14 }
  0x73   : > { %2316 = vmatmul.msk.f32.gmra.mxu2 %vm601_vm0, %v565_v20 }
  0x74   : > { %1693 = vmatpush.msrb.mxu1 %v575_v7  ;;  %1281 = vmatpush.msra.mxu2 %v3117_v13 }
  0x75   : > { %2308 = vmatmul.msk.f32.gmra.mxu0 %vm601_vm0, %v557_v21 }
  0x76   : > { %1694 = vmatpush.msrb.mxu1 %v574_v8  ;;  %2320 = vmatmul.msk.f32.gmra.mxu3 %vm601_vm0, %v569_v22 }
  0x77   : > { %1282 = vmatpush.msra.mxu2 %v3129_v17 }
  0x78   : > { %1695 = vmatpush.msrb.mxu1 %v573_v12 }
  0x79   : > { %1283 = vmatpush.msra.mxu2 %v593_v26 }
  0x7a   : > { %1696 = vmatpush.msrb.mxu1 %v572_v14 }
  0x7b   : > { %2317 = vmatmul.msk.f32.gmra.mxu2 %vm601_vm0, %v566_v25 }
  0x7d   : > { %2309 = vmatmul.msk.f32.gmra.mxu0 %vm601_vm0, %v558_v23 }
  0x7e   : > { %2321 = vmatmul.msk.f32.gmra.mxu3 %vm601_vm0, %v570_v28 }
  0x85   : > { %2310 = vmatmul.msk.f32.gmra.mxu0 %vm601_vm0, %v559_v24 }
  0x8d   : > { %2311 = vmatmul.msk.f32.gmra.mxu0 %vm601_vm0, %v560_v27 }
  0x95   : > { %2312 = vmatmul.msk.f32.gmra.mxu0 %vm601_vm0, %v561_v29  ;;  %v3798_v29 = vmov 0  }
  0x96   : > { %2435 = vset.pattern.permute.xlu0 %v3798_v29  ;;  %2437 = vset.pattern.permute.xlu2 %v3798_v29 }
  0x97   : > { %2436 = vset.pattern.permute.xlu1 %v3798_v29 }
  0xe0   : > { %v688_v32 = vpop.f32.mrf.mxu1 }
  0xe1   : > { %v3173_v33 = vadd.f32 %v3165_v30, %v688_v32 }
  0xe2   : > { %v667_v34 = vpop.f32.mrf.mxu0 }
  0xe3   : > { %3844 = vst [vmem:[#allocation26_spill] sm:$0xff] %v3173_v33  ;;  %v725_v35 = vmul.f32 %v3170_v31, %v3173_v33  ;;  %v3178_v36 = vadd.f32 %v3165_v30, %v667_v34 }
  0xe5   : > { %3845 = vst [vmem:[#allocation27_spill] sm:$0xff] %v3178_v36  ;;  %v755_v37 = vsel %vm601_vm0, %v725_v35, 0.0  ;;  %v718_v39 = vmul.f32 %v3170_v31, %v3178_v36  ;;  %v3278_v35 = vld [vmem:[#allocation4] ss:$0 sm:$0xff] }
  0xe6   : > { %756 = vadd.xlane.f32.xlu1 %v755_v37  ;;  %v691_v40 = vpop.f32.mrf.mxu2 }
  0xe7   : > { %v3189_v41 = vadd.f32 %v3165_v30, %v691_v40  ;;  %v734_v42 = vsel %vm601_vm0, %v718_v39, 0.0 }
  0xe8   : > { %v810_v43 = vpop.f32.mrf.mxu1  ;;  %735 = vadd.xlane.f32.xlu0 %v734_v42 }
  0xe9   : > { %3846 = vst [vmem:[#allocation28_spill] sm:$0xff] %v3189_v41  ;;  %v3193_v44 = vadd.f32 %v3184_v38, %v810_v43  ;;  %v726_v45 = vmul.f32 %v3170_v31, %v3189_v41  ;;  %v703_v46 = vpop.f32.mrf.mxu3 }
  0xea   : > { %v670_v47 = vpop.f32.mrf.mxu0  ;;  %v3198_v48 = vadd.f32 %v3165_v30, %v703_v46 }
  0xeb   : > { %2323 = vmatmul.msk.f32.vlgmr.msrb.gmra.mxu2 %vm601_vm0, %v3193_v44  ;;  %v758_v49 = vsel %vm601_vm0, %v726_v45, 0.0  ;;  %v3204_v50 = vadd.f32 %v3165_v30, %v670_v47 }
  0xec   : > { %3847 = vst [vmem:[#allocation29_spill] sm:$0xff] %v3198_v48  ;;  %759 = vadd.xlane.f32.xlu2 %v758_v49  ;;  %1716 = vmatpush.msrb.mxu2 %v3105_v11  ;;  %v730_v51 = vmul.f32 %v3170_v31, %v3198_v48 }
  0xed   : > { %v719_v52 = vmul.f32 %v3170_v31, %v3204_v50 }
  0xee   : > { %v694_v53 = vpop.f32.mrf.mxu2  ;;  %1717 = vmatpush.msrb.mxu2 %v3117_v13  ;;  %v770_v56 = vsel %vm601_vm0, %v730_v51, 0.0 }
  0xef   : > { %v3213_v54 = vadd.f32 %v3165_v30, %v694_v53  ;;  %v737_v55 = vsel %vm601_vm0, %v719_v52, 0.0 }
  0xf0   : > { %738 = vadd.xlane.f32.xlu1 %v737_v55  ;;  %1718 = vmatpush.msrb.mxu2 %v3129_v17 }
  0xf1   : > { %3848 = vst [vmem:[#allocation30_spill] sm:$0xff] %v3213_v54  ;;  %v727_v57 = vmul.f32 %v3170_v31, %v3213_v54  ;;  %v706_v0 = vpop.f32.mrf.mxu3 }
  0xf2   : > { %1719 = vmatpush.msrb.mxu2 %v593_v26  ;;  %v673_v63 = vpop.f32.mrf.mxu0  ;;  %v3228_v3 = vadd.f32 %v3165_v30, %v706_v0 }
  0xf3   : > { %v761_v58 = vsel %vm601_vm0, %v727_v57, 0.0  ;;  %v3234_v5 = vadd.f32 %v3165_v30, %v673_v63 }
  0xf4   : > { %771 = vadd.xlane.f32.xlu2 %v770_v56  ;;  %3850 = vst [vmem:[#allocation32_spill] sm:$0xff] %v3228_v3  ;;  %v731_v8 = vmul.f32 %v3170_v31, %v3228_v3 }
  0xf5   : > { %v720_v13 = vmul.f32 %v3170_v31, %v3234_v5 }
  0xf6   : > { %v697_v59 = vpop.f32.mrf.mxu2  ;;  %v773_v10 = vsel %vm601_vm0, %v731_v8, 0.0 }
  0xf7   : > { %v3222_v60 = vadd.f32 %v3165_v30, %v697_v59  ;;  %v740_v16 = vsel %vm601_vm0, %v720_v13, 0.0 }
  0xf8   : > { %762 = vadd.xlane.f32.xlu1 %v761_v58 }
  0xf9   : > { %3849 = vst [vmem:[#allocation31_spill] sm:$0xff] %v3222_v60  ;;  %v728_v61 = vmul.f32 %v3170_v31, %v3222_v60  ;;  %v709_v2 = vpop.f32.mrf.mxu3 }
  0xfa   : > { %v676_v1 = vpop.f32.mrf.mxu0  ;;  %v3231_v4 = vadd.f32 %v3165_v30, %v709_v2 }
  0xfb   : > { %v764_v62 = vsel %vm601_vm0, %v728_v61, 0.0  ;;  %v3237_v6 = vadd.f32 %v3165_v30, %v676_v1 }
  0xfc   : > { %765 = vadd.xlane.f32.xlu2 %v764_v62  ;;  %3851 = vst [vmem:[#allocation33_spill] sm:$0xff] %v3231_v4  ;;  %v732_v7 = vmul.f32 %v3170_v31, %v3231_v4 }
  0xfd   : > { %v721_v12 = vmul.f32 %v3170_v31, %v3237_v6 }
  0xfe   : > { %v776_v9 = vsel %vm601_vm0, %v732_v7, 0.0  ;;  %v700_v19 = vpop.f32.mrf.mxu2 }
  0xff   : > { %v743_v15 = vsel %vm601_vm0, %v721_v12, 0.0  ;;  %v3257_v20 = vadd.f32 %v3165_v30, %v700_v19 }
 0x100   : > { %774 = vadd.xlane.f32.xlu1 %v773_v10 }
 0x101   : > { %3853 = vst [vmem:[#allocation35_spill] sm:$0xff] %v3257_v20  ;;  %v729_v22 = vmul.f32 %v3170_v31, %v3257_v20  ;;  %v712_v40 = vpop.f32.mrf.mxu3 }
 0x102   : > { %v679_v11 = vpop.f32.mrf.mxu0  ;;  %v3282_v42 = vadd.f32 %v3165_v30, %v712_v40 }
 0x103   : > { %v3250_v14 = vadd.f32 %v3165_v30, %v679_v11  ;;  %v767_v23 = vsel %vm601_vm0, %v729_v22, 0.0 }
 0x104   : > { %777 = vadd.xlane.f32.xlu2 %v776_v9  ;;  %3854 = vst [vmem:[#allocation36_spill] sm:$0xff] %v3282_v42  ;;  %v733_v43 = vmul.f32 %v3170_v31, %v3282_v42 }
 0x105   : > { %3852 = vst [vmem:[#allocation34_spill] sm:$0xff] %v3250_v14  ;;  %v722_v17 = vmul.f32 %v3170_v31, %v3250_v14 }
 0x106   : > { %v779_v45 = vsel %vm601_vm0, %v733_v43, 0.0 }
 0x107   : > { %v746_v21 = vsel %vm601_vm0, %v722_v17, 0.0 }
 0x108   : > { %741 = vadd.xlane.f32.xlu1 %v740_v16 }
 0x10a   : > { %v682_v18 = vpop.f32.mrf.mxu0 }
 0x10b   : > { %v3264_v24 = vadd.f32 %v3165_v30, %v682_v18 }
 0x10c   : > { %744 = vadd.xlane.f32.xlu2 %v743_v15 }
 0x10d   : > { %v723_v28 = vmul.f32 %v3170_v31, %v3264_v24 }
 0x10f   : > { %v749_v34 = vsel %vm601_vm0, %v723_v28, 0.0 }
 0x110   : > { %768 = vadd.xlane.f32.xlu1 %v767_v23 }
 0x112   : > { %v685_v25 = vpop.f32.mrf.mxu0 }
 0x113   : > { %v3267_v26 = vadd.f32 %v3165_v30, %v685_v25 }
 0x114   : > { %747 = vadd.xlane.f32.xlu2 %v746_v21 }
 0x115   : > { %v724_v27 = vmul.f32 %v3170_v31, %v3267_v26 }
 0x117   : > { %v752_v32 = vsel %vm601_vm0, %v724_v27, 0.0 }
 0x118   : > { %750 = vadd.xlane.f32.xlu1 %v749_v34 }
 0x11c   : > { %753 = vadd.xlane.f32.xlu2 %v752_v32 }
 0x159   : > { %v3287_v46 = vpop.xlane.xlu1 %756 }
 0x15b   : > { %v3303_v31 = vpop.xlane.xlu0 %735 }
 0x15f   : > { %v3289_v47 = vpop.xlane.xlu2 %759 }
 0x163   : > { %v3291_v49 = vpop.xlane.xlu1 %738 }
 0x167   : > { %v3293_v51 = vpop.xlane.xlu2 %771 }
 0x16b   : > { %v3295_v52 = vpop.xlane.xlu1 %762 }
 0x16e   : > { %v836_v37 = vpop.f32.mrf.mxu2 }
 0x16f   : > { %v837_v39 = vadd.f32 %v3278_v35, %v836_v37  ;;  %v3297_v53 = vpop.xlane.xlu2 %765 }
 0x171   : > { %841 = vperm.xlu0 %2435, %v837_v39  }
 0x173   : > { %v3299_v30 = vpop.xlane.xlu1 %774 }
 0x177   : > { %v3301_v55 = vpop.xlane.xlu2 %777 }
 0x17b   : > { %v3305_v56 = vpop.xlane.xlu1 %741 }
 0x17f   : > { %v3307_v57 = vpop.xlane.xlu2 %744 }
 0x183   : > { %v3312_v61 = vpop.xlane.xlu1 %768 }
 0x187   : > { %v3318_v2 = vpop.xlane.xlu2 %747 }
 0x18b   : > { %v3321_v8 = vpop.xlane.xlu1 %750 }
 0x18f   : > { %v3327_v17 = vpop.xlane.xlu2 %753 }
 0x19b   : > { %780 = vadd.xlane.f32.xlu0 %v779_v45 }
 0x1e3   : > { %v3309_v58 = vpop.permute.xlu0 %841 }
 0x1e4   : > { %v844_v59 = vperm.slane %v3309_v58, 1  ;;  %v843_v62 = vperm.slane %v3309_v58, 0  ;;  %v845_v7 = vperm.slane %v3309_v58, 2  ;;  %v846_v16 = vperm.slane %v3309_v58, 3 }
 0x1e5   : > { %v847_v18 = vperm.slane %v3309_v58, 4  ;;  %v848_v28 = vperm.slane %v3309_v58, 5  ;;  %v849_v45 = vperm.slane %v3309_v58, 6 }
 0x1e6   : > { %v861_v63 = vadd.f32 %v844_v59, %v3305_v56  ;;  %v860_v0 = vadd.f32 %v843_v62, %v3291_v49  ;;  %v859_v1 = vadd.f32 %v843_v62, %v3303_v31  ;;  %v862_v9 = vadd.f32 %v844_v59, %v3307_v57 }
 0x1e7   : > { %v863_v10 = vadd.f32 %v845_v7, %v3318_v2  ;;  %v864_v12 = vadd.f32 %v845_v7, %v3321_v8  ;;  %v865_v19 = vadd.f32 %v846_v16, %v3327_v17  ;;  %v866_v21 = vadd.f32 %v846_v16, %v3287_v46 }
 0x1e8   : > { %2485 = vtanh.f32 %v861_v63  ;;  %v867_v23 = vadd.f32 %v847_v18, %v3289_v47  ;;  %v868_v32 = vadd.f32 %v847_v18, %v3295_v52  ;;  %v869_v34 = vadd.f32 %v848_v28, %v3297_v53 }
 0x1e9   : > { %2487 = vtanh.f32 %v860_v0  ;;  %v870_v39 = vadd.f32 %v848_v28, %v3312_v61  ;;  %v850_v59 = vperm.slane %v3309_v58, 7  ;;  %v871_v62 = vadd.f32 %v849_v45, %v3293_v51 }
 0x1ea   : > { %2489 = vtanh.f32 %v859_v1  ;;  %v872_v63 = vadd.f32 %v849_v45, %v3299_v30  ;;  %v782_v28 = vlaneseq }
 0x1eb   : > { %2491 = vtanh.f32 %v862_v9  ;;  %v873_v1 = vadd.f32 %v850_v59, %v3301_v55 }
 0x1ec   : > { %2493 = vtanh.f32 %v863_v10 }
 0x1ed   : > { %2495 = vtanh.f32 %v864_v12 }
 0x1ee   : > { %v2486_v11 = vpop.eup %2485  ;;  %2497 = vtanh.f32 %v865_v19 }
 0x1ef   : > { %v2488_v13 = vpop.eup %2487  ;;  %914 = vperm.xlu0 %2435, %v2486_v11   ;;  %2499 = vtanh.f32 %v866_v21 }
 0x1f0   : > { %v2490_v15 = vpop.eup %2489  ;;  %911 = vperm.xlu2 %2437, %v2488_v13   ;;  %2501 = vtanh.f32 %v867_v23 }
 0x1f1   : > { %908 = vperm.xlu1 %2436, %v2490_v15   ;;  %v2492_v22 = vpop.eup %2491  ;;  %2503 = vtanh.f32 %v868_v32 }
 0x1f2   : > { %v2494_v25 = vpop.eup %2493  ;;  %2505 = vtanh.f32 %v869_v34  ;;  %v3346_v34 = vand.u32 127, %v782_v28 }
 0x1f3   : > { %v2496_v27 = vpop.eup %2495  ;;  %2507 = vtanh.f32 %v870_v39 }
 0x1f4   : > { %v2498_v37 = vpop.eup %2497  ;;  %2509 = vtanh.f32 %v871_v62  ;;  %v3349_v39 = vadd.s32 4294967288, %v3346_v34 }
 0x1f5   : > { %v2500_v40 = vpop.eup %2499  ;;  %2511 = vtanh.f32 %v872_v63 }
 0x1f6   : > { %v2502_v43 = vpop.eup %2501  ;;  %2513 = vtanh.f32 %v873_v1 }
 0x1f7   : > { %917 = vperm.xlu0 %2435, %v2492_v22   ;;  %v2504_v0 = vpop.eup %2503 }
 0x1f8   : > { %920 = vperm.xlu2 %2437, %v2494_v25   ;;  %v2506_v7 = vpop.eup %2505 }
 0x1f9   : > { %923 = vperm.xlu1 %2436, %v2496_v27   ;;  %v2508_v9 = vpop.eup %2507 }
 0x1fa   : > { %v2510_v58 = vpop.eup %2509 }
 0x1fb   : > { %v2512_v12 = vpop.eup %2511 }
 0x1fc   : > { %v2514_v13 = vpop.eup %2513 }
 0x1ff   : > { %926 = vperm.xlu0 %2435, %v2498_v37  }
 0x200   : > { %929 = vperm.xlu2 %2437, %v2500_v40  }
 0x201   : > { %932 = vperm.xlu1 %2436, %v2502_v43  }
 0x207   : > { %935 = vperm.xlu0 %2435, %v2504_v0  }
 0x208   : > { %938 = vperm.xlu2 %2437, %v2506_v7  }
 0x209   : > { %941 = vperm.xlu1 %2436, %v2508_v9  }
 0x20e   : > { %v3342_v10 = vpop.xlane.xlu0 %780 }
 0x20f   : > { %v874_v11 = vadd.f32 %v850_v59, %v3342_v10  ;;  %944 = vperm.xlu0 %2435, %v2510_v58  }
 0x210   : > { %947 = vperm.xlu2 %2437, %v2512_v12  }
 0x211   : > { %2515 = vtanh.f32 %v874_v11  ;;  %950 = vperm.xlu1 %2436, %v2514_v13  }
 0x217   : > { %v2516_v15 = vpop.eup %2515 }
 0x218   : > { %953 = vperm.xlu0 %2435, %v2516_v15  }
 0x24a   : > { %v912_v16 = vpop.permute.xlu2 %911 }
 0x24b   : > { %v957_v0 = vperm.slane %v912_v16, %v3349_v39 }
 0x252   : > { %v921_v21 = vpop.permute.xlu2 %920 }
 0x253   : > { %v963_v9 = vperm.slane %v921_v21, %v3346_v34 }
 0x25a   : > { %v930_v25 = vpop.permute.xlu2 %929 }
 0x25b   : > { %v967_v12 = vperm.slane %v930_v25, %v3349_v39 }
 0x261   : > { %v915_v18 = vpop.permute.xlu0 %914 }
 0x262   : > { %v939_v40 = vpop.permute.xlu2 %938  ;;  %v960_v62 = vperm.slane %v915_v18, %v3346_v34 }
 0x263   : > { %v909_v19 = vpop.permute.xlu1 %908 }
 0x264   : > { %v955_v59 = vperm.slane %v909_v19, %v3346_v34 }
 0x266   : > { %v959_v13 = vsel %vm958_vm1, %v957_v0, %v955_v59  ;;  %v785_v0 = vstv %s3358_s22  ;;  %s2165_s22 = sshll.u32 %s2161_s28, 4  ;;  %s2166_s22 = int_to_ptr.hbm [resolvable:$true] %s2165_s22 }
 0x267   : > { %vm3382_vm9 = vcmp.lt.s32.totalorder %v3346_v34, %v785_v0  ;;  %s2764_s5 = sshra.s32 %s2166_s22, 4  ;;  %s2765_s5 = int_to_ptr.hbm [resolvable:$true] %s2764_s5 }
 0x268   : > { %s2766_s0 = scalar_lea.hbm %s2765_s5, 8  ;;  %p2771_p2 = scmp.lt.s32.totalorder %s2765_s5, %s3877_s15 }
 0x269   : > { %v918_v22 = vpop.permute.xlu0 %917  ;;  %p2767_p1 = scmp.ne.s32.totalorder %s2765_s5, %s2766_s0  ;;  %p2772_p10 = scmp.lt.s32.totalorder %s2770_s19, %s2766_s0 }
 0x26a   : > { %v961_v43 = vperm.slane %v918_v22, %v3349_v39  ;;  %v948_v19 = vpop.permute.xlu2 %947 }
 0x26b   : > { %v924_v23 = vpop.permute.xlu1 %923  ;;  %p2768_p4 = pnand %p2767_p1, %p3009_p7  ;;  %p2773_p11 = por %p2772_p10, %p2771_p2 }
 0x26c   : > { %v964_v63 = vperm.slane %v924_v23, %v3349_v39  ;;  %v962_v1 = vsel %vm958_vm1, %v961_v43, %v960_v62  ;;  %v976_v43 = vperm.slane %v948_v19, %v3349_v39 }
 0x26d   : > { %v982_v16 = vsel %vm981_vm2, %v962_v1, %v959_v13  ;;  %p2769_p8 = pneg %p2768_p4 }
 0x26e   : > { %v965_v15 = vsel %vm958_vm1, %v964_v63, %v963_v9 }
 0x26f   : > { %p2774_p9 = pnand %p2773_p11, %p2769_p8 }
 0x271   : > { %v927_v27 = vpop.permute.xlu0 %926 }
 0x272   : > { %v966_v7 = vperm.slane %v927_v27, %v3346_v34  ;;  %v972_v27 = vperm.slane %v939_v40, %v3346_v34 }
 0x273   : > { %v933_v32 = vpop.permute.xlu1 %932 }
 0x274   : > { %v969_v18 = vperm.slane %v933_v32, %v3346_v34  ;;  %v968_v22 = vsel %vm958_vm1, %v967_v12, %v966_v7 }
 0x279   : > { %v936_v37 = vpop.permute.xlu0 %935 }
 0x27a   : > { %v970_v11 = vperm.slane %v936_v37, %v3349_v39  ;;  %v984_v37 = vsel %vm983_vm3, %v965_v15, %v982_v16 }
 0x27b   : > { %v942_v45 = vpop.permute.xlu1 %941  ;;  %v986_v32 = vsel %vm985_vm4, %v968_v22, %v984_v37 }
 0x27c   : > { %v973_v21 = vperm.slane %v942_v45, %v3349_v39  ;;  %v971_v23 = vsel %vm958_vm1, %v970_v11, %v969_v18 }
 0x27d   : > { %v988_v63 = vsel %vm987_vm5, %v971_v23, %v986_v32 }
 0x27e   : > { %v974_v62 = vsel %vm958_vm1, %v973_v21, %v972_v27 }
 0x27f   : > { %v990_v11 = vsel %vm989_vm6, %v974_v62, %v988_v63 }
 0x281   : > { %v945_v58 = vpop.permute.xlu0 %944 }
 0x282   : > { %v975_v25 = vperm.slane %v945_v58, %v3346_v34 }
 0x283   : > { %v951_v59 = vpop.permute.xlu1 %950 }
 0x284   : > { %v977_v45 = vsel %vm958_vm1, %v976_v43, %v975_v25  ;;  %v978_v7 = vperm.slane %v951_v59, %v3346_v34  ;;  %v3395_v25 = vshrl.u32 %v782_v28, 7 }
 0x285   : > { %v992_v12 = vsel %vm991_vm7, %v977_v45, %v990_v11 }
 0x286   : > { %v3398_v27 = vadd.s32 8, %v3395_v25  ;;  %2442 = vset.pattern.permute.xlu1 %v3395_v25  ;;  %2438 = vset.pattern.permute.xlu0 %v3395_v25 }
 0x288   : > { %2441 = vset.pattern.permute.xlu2 %v3398_v27 }
 0x28a   : > { %v954_v1 = vpop.permute.xlu0 %953 }
 0x28b   : > { %v979_v40 = vperm.slane %v954_v1, %v3349_v39 }
 0x28d   : > { %v980_v58 = vsel %vm958_vm1, %v979_v40, %v978_v7 }
 0x28e   : > { %v994_v13 = vsel %vm993_vm8, %v980_v58, %v992_v12 }
 0x28f   : > { %v996_v15 = vsel %vm3382_vm9, %v994_v13, -1e+30 }
 0x290   : > { %v998_v16 = vsel %vm997_vm10, %v996_v15, -inf }
 0x291   : > { %999 = vmax.xlane.f32.xlu2 %v998_v16 }
 0x304   : > { %v1000_v18 = vpop.xlane.xlu2 %999 }
 0x305   : > { %v1001_v19 = vsub.f32 %v996_v15, %v1000_v18 }
 0x307   : > { %v1002_v22 = vmul.f32 1.442695, %v1001_v19 }
 0x309   : > { %2517 = vpow2.f32 %v1002_v22  ;;  %v3417_v22 = vld [vmem:[#allocation11 + $0x18] sm:$0xff] }
 0x30a   : > { %1233 = vmatpush.msrb.mxu3 %v3417_v22 }
 0x30f   : > { %v2518_v21 = vpop.eup %2517 }
 0x310   : > { %v1004_v23 = vsel %vm997_vm10, %v2518_v21, 0.0 }
 0x311   : > { %1005 = vadd.xlane.f32.xlu1 %v1004_v23 }
 0x384   : > { %v1006_v37 = vpop.xlane.xlu1 %1005 }
 0x385   : > { %2519 = vrcp.f32 %v1006_v37 }
 0x38b   : > { %v2520_v43 = vpop.eup %2519 }
 0x38c   : > { %v1008_v32 = vmul.f32 %v2520_v43, %v2518_v21  ;;  %v3419_v21 = vld [vmem:[#allocation11 + $0x10] sm:$0xff] }
 0x38d   : > { %1234 = vmatpush.msrb.mxu3 %v3419_v21 }
 0x38e   : > { %v1035_v59 = vperm.slane %v1008_v32, 2  ;;  %v1022_v62 = vperm.slane %v1008_v32, 1  ;;  %v1009_v63 = vperm.slane %v1008_v32, 0  ;;  %v1048_v28 = vperm.slane %v1008_v32, 3 }
 0x38f   : > { %v1074_v0 = vperm.slane %v1008_v32, 5  ;;  %v1061_v45 = vperm.slane %v1008_v32, 4  ;;  %v1087_v1 = vperm.slane %v1008_v32, 6  ;;  %v1100_v7 = vperm.slane %v1008_v32, 7 }
 0x390   : > { %1040 = vperm.xlu1 %2442, %v1035_v59   ;;  %1033 = vperm.xlu2 %2441, %v1022_v62  }
 0x391   : > { %1014 = vperm.xlu0 %2438, %v1009_v63  }
 0x398   : > { %2445 = vset.pattern.permute.xlu1 %v3398_v27  ;;  %2444 = vset.pattern.permute.xlu2 %v3395_v25 }
 0x399   : > { %2439 = vset.pattern.permute.xlu0 %v3398_v27 }
 0x3a0   : > { %1059 = vperm.xlu1 %2445, %v1048_v28   ;;  %1053 = vperm.xlu2 %2444, %v1048_v28  }
 0x3a1   : > { %1020 = vperm.xlu0 %2439, %v1009_v63  }
 0x3a8   : > { %2448 = vset.pattern.permute.xlu1 %v3395_v25  ;;  %2447 = vset.pattern.permute.xlu2 %v3398_v27 }
 0x3a9   : > { %2440 = vset.pattern.permute.xlu0 %v3395_v25 }
 0x3b0   : > { %1079 = vperm.xlu1 %2448, %v1074_v0   ;;  %1072 = vperm.xlu2 %2447, %v1061_v45  }
 0x3b1   : > { %1027 = vperm.xlu0 %2440, %v1022_v62  }
 0x3b8   : > { %1092 = vperm.xlu1 %2448, %v1087_v1   ;;  %1085 = vperm.xlu2 %2447, %v1074_v0  }
 0x3b9   : > { %2443 = vset.pattern.permute.xlu0 %v3398_v27 }
 0x3c0   : > { %2451 = vset.pattern.permute.xlu1 %v3398_v27  ;;  %2450 = vset.pattern.permute.xlu2 %v3395_v25 }
 0x3c1   : > { %1046 = vperm.xlu0 %2443, %v1035_v59  }
 0x3c8   : > { %1111 = vperm.xlu1 %2451, %v1100_v7   ;;  %1105 = vperm.xlu2 %2450, %v1100_v7  }
 0x3c9   : > { %2446 = vset.pattern.permute.xlu0 %v3395_v25 }
 0x3d0   : > { %2452 = vset.pattern.permute.xlu2 %v3798_v29  ;;  %2453 = vset.pattern.permute.xlu1 %v3798_v29 }
 0x3d1   : > { %1066 = vperm.xlu0 %2446, %v1061_v45  }
 0x3d9   : > { %2449 = vset.pattern.permute.xlu0 %v3398_v27 }
 0x3e1   : > { %1098 = vperm.xlu0 %2449, %v1087_v1  }
 0x3e9   : > { %2454 = vset.pattern.permute.xlu0 %v3798_v29 }
 0x3ea   : > { %v1034_v58 = vpop.permute.xlu2 %1033 }
 0x3eb   : > { %v1116_v59 = vmul.f32 %v1034_v58, %v3237_v6 }
 0x3fa   : > { %v1054_v15 = vpop.permute.xlu2 %1053 }
 0x402   : > { %v1041_v11 = vpop.permute.xlu1 %1040 }
 0x403   : > { %v1015_v40 = vpop.permute.xlu0 %1014  ;;  %v1117_v63 = vmul.f32 %v1041_v11, %v3250_v14 }
 0x404   : > { %v1113_v0 = vmul.f32 %v1015_v40, %v3178_v36 }
 0x405   : > { %v1147_v58 = vsel %vm601_vm0, %v1117_v63, 0.0 }
 0x406   : > { %v1129_v11 = vsel %vm601_vm0, %v1113_v0, 0.0 }
 0x40a   : > { %v1073_v19 = vpop.permute.xlu2 %1072 }
 0x40b   : > { %v1122_v40 = vmul.f32 %v1073_v19, %v3213_v54 }
 0x412   : > { %v1060_v13 = vpop.permute.xlu1 %1059  ;;  %v1086_v28 = vpop.permute.xlu2 %1085 }
 0x413   : > { %v1021_v12 = vpop.permute.xlu0 %1020  ;;  %v1120_v1 = vmul.f32 %v1060_v13, %v3173_v33  ;;  %v1124_v63 = vmul.f32 %v1086_v28, %v3257_v20 }
 0x414   : > { %v1114_v62 = vmul.f32 %v1021_v12, %v3204_v50 }
 0x416   : > { %v1130_v29 = vsel %vm601_vm0, %v1114_v62, 0.0  ;;  %v3444_v62 = vld [vmem:[#allocation11] sm:$0xff] }
 0x417   : > { %v1131_v36 = vadd.f32 %v1130_v29, %v1129_v11 }
 0x422   : > { %v1080_v18 = vpop.permute.xlu1 %1079 }
 0x423   : > { %v1028_v16 = vpop.permute.xlu0 %1027 }
 0x424   : > { %v1115_v37 = vmul.f32 %v1028_v16, %v3234_v5  ;;  %v1139_v16 = vsel %vm601_vm0, %v1116_v59, 0.0  ;;  %v3442_v59 = vld [vmem:[#allocation11 + $0x8] sm:$0xff] }
 0x425   : > { %1235 = vmatpush.msrb.mxu3 %v3442_v59 }
 0x426   : > { %v1138_v45 = vsel %vm601_vm0, %v1115_v37, 0.0  ;;  %v1157_v37 = vsel %vm601_vm0, %v1120_v1, 0.0 }
 0x427   : > { %v1140_v12 = vadd.f32 %v1139_v16, %v1138_v45  ;;  %v1106_v45 = vpop.permute.xlu2 %1105  ;;  %v1132_v16 = vrot.slane %v1131_v36, 4  ;;  %1236 = vmatpush.msrb.mxu3 %v3444_v62 }
 0x428   : > { %v1127_v28 = vmul.f32 %v1106_v45, %v3231_v4 }
 0x429   : > { %v1141_v0 = vrot.slane %v1140_v12, 4  ;;  %1669 = vmatpush.msra.mxu3 %v3417_v22 }
 0x42a   : > { %v3424_v43 = vpop.permute.xlu1 %1092  ;;  %v1192_v20 = vsel %vm601_vm0, %v1127_v28, 0.0 }
 0x42b   : > { %1670 = vmatpush.msra.mxu3 %v3419_v21 }
 0x42d   : > { %1671 = vmatpush.msra.mxu3 %v3442_v59 }
 0x42f   : > { %1672 = vmatpush.msra.mxu3 %v3444_v62 }
 0x433   : > { %v1047_v23 = vpop.permute.xlu0 %1046 }
 0x434   : > { %v1118_v32 = vmul.f32 %v1047_v23, %v3264_v24  ;;  %v1119_v23 = vmul.f32 %v1054_v15, %v3267_v26 }
 0x436   : > { %v1148_v7 = vsel %vm601_vm0, %v1118_v32, 0.0  ;;  %v1123_v32 = vmul.f32 %v1080_v18, %v3222_v60  ;;  %v1156_v15 = vsel %vm601_vm0, %v1119_v23, 0.0  ;;  %v1166_v18 = vsel %vm601_vm0, %v1122_v40, 0.0 }
 0x437   : > { %v1149_v14 = vadd.f32 %v1148_v7, %v1147_v58  ;;  %v1158_v19 = vadd.f32 %v1157_v37, %v1156_v15  ;;  %v1142_v37 = vadd.f32 %v1141_v0, %v1140_v12 }
 0x438   : > { %v1174_v23 = vsel %vm601_vm0, %v1123_v32, 0.0 }
 0x439   : > { %v1150_v29 = vrot.slane %v1149_v14, 4  ;;  %v1159_v15 = vrot.slane %v1158_v19, 4  ;;  %v1143_v32 = vrot.slane %v1142_v37, 2 }
 0x43a   : > { %v1112_v13 = vpop.permute.xlu1 %1111 }
 0x43b   : > { %v1128_v1 = vmul.f32 %v1112_v13, %v3282_v42  ;;  %v1151_v60 = vadd.f32 %v1150_v29, %v1149_v14 }
 0x43d   : > { %v1193_v13 = vsel %vm601_vm0, %v1128_v1, 0.0 }
 0x43e   : > { %v1194_v45 = vadd.f32 %v1193_v13, %v1192_v20 }
 0x440   : > { %v1195_v0 = vrot.slane %v1194_v45, 4 }
 0x442   : > { %v1196_v20 = vadd.f32 %v1195_v0, %v1194_v45 }
 0x443   : > { %v1067_v33 = vpop.permute.xlu0 %1066 }
 0x444   : > { %v1121_v7 = vmul.f32 %v1067_v33, %v3189_v41  ;;  %v1175_v33 = vsel %vm601_vm0, %v1124_v63, 0.0  ;;  %v1144_v63 = vadd.f32 %v1143_v32, %v1142_v37 }
 0x445   : > { %v1176_v42 = vadd.f32 %v1175_v33, %v1174_v23  ;;  %v1125_v23 = vmul.f32 %v3424_v43, %v3198_v48 }
 0x446   : > { %v1165_v58 = vsel %vm601_vm0, %v1121_v7, 0.0  ;;  %v1133_v7 = vadd.f32 %v1132_v16, %v1131_v36  ;;  %v1145_v33 = vrot.slane %v1144_v63, 1 }
 0x447   : > { %v1167_v11 = vadd.f32 %v1166_v18, %v1165_v58  ;;  %v1160_v18 = vadd.f32 %v1159_v15, %v1158_v19  ;;  %v1152_v58 = vrot.slane %v1151_v60, 2  ;;  %v1177_v14 = vrot.slane %v1176_v42, 4 }
 0x448   : > { %v1134_v12 = vrot.slane %v1133_v7, 2  ;;  %v1183_v37 = vsel %vm601_vm0, %v1125_v23, 0.0 }
 0x449   : > { %v1168_v40 = vrot.slane %v1167_v11, 4  ;;  %v1161_v29 = vrot.slane %v1160_v18, 2  ;;  %v1153_v1 = vadd.f32 %v1152_v58, %v1151_v60  ;;  %v1178_v16 = vadd.f32 %v1177_v14, %v1176_v42 }
 0x44a   : > { %v1135_v36 = vadd.f32 %v1134_v12, %v1133_v7  ;;  %v1146_v7 = vadd.f32 %v1145_v33, %v1144_v63  ;;  %v1197_v42 = vrot.slane %v1196_v20, 2 }
 0x44b   : > { %v1169_v4 = vadd.f32 %v1168_v40, %v1167_v11  ;;  %v1162_v11 = vadd.f32 %v1161_v29, %v1160_v18  ;;  %v1154_v15 = vrot.slane %v1153_v1, 1  ;;  %v1179_v41 = vrot.slane %v1178_v16, 2 }
 0x44c   : > { %v1136_v40 = vrot.slane %v1135_v36, 1  ;;  %v1198_v29 = vadd.f32 %v1197_v42, %v1196_v20 }
 0x44d   : > { %v1170_v54 = vrot.slane %v1169_v4, 2  ;;  %v1155_v58 = vadd.f32 %v1154_v15, %v1153_v1  ;;  %v1163_v14 = vrot.slane %v1162_v11, 1  ;;  %v1180_v45 = vadd.f32 %v1179_v41, %v1178_v16 }
 0x44e   : > { %v1137_v48 = vadd.f32 %v1136_v40, %v1135_v36 }
 0x44f   : > { %v1171_v13 = vadd.f32 %v1170_v54, %v1169_v4  ;;  %v1164_v23 = vadd.f32 %v1163_v14, %v1162_v11 }
 0x450   : > { %v1212_v18 = vsel %vm981_vm2, %v1146_v7, %v1137_v48 }
 0x451   : > { %v1172_v12 = vrot.slane %v1171_v13, 1  ;;  %v1213_v54 = vsel %vm983_vm3, %v1155_v58, %v1212_v18 }
 0x452   : > { %v1214_v63 = vsel %vm985_vm4, %v1164_v23, %v1213_v54 }
 0x453   : > { %v1099_v28 = vpop.permute.xlu0 %1098  ;;  %v1173_v4 = vadd.f32 %v1172_v12, %v1171_v13 }
 0x454   : > { %v1126_v19 = vmul.f32 %v1099_v28, %v3228_v3  ;;  %v1181_v3 = vrot.slane %v1180_v45, 1 }
 0x455   : > { %v1215_v33 = vsel %vm987_vm5, %v1173_v4, %v1214_v63 }
 0x456   : > { %v1184_v60 = vsel %vm601_vm0, %v1126_v19, 0.0  ;;  %v1182_v15 = vadd.f32 %v1181_v3, %v1180_v45  ;;  %v3483_v3 = vld [vmem:[%s3784_s11] ss:$0 sm:$0xff] }
 0x457   : > { %v1185_v32 = vadd.f32 %v1184_v60, %v1183_v37  ;;  %v1199_v37 = vrot.slane %v1198_v29, 1 }
 0x458   : > { %v1216_v16 = vsel %vm989_vm6, %v1182_v15, %v1215_v33 }
 0x459   : > { %v1186_v43 = vrot.slane %v1185_v32, 4  ;;  %v1200_v41 = vadd.f32 %v1199_v37, %v1198_v29 }
 0x45b   : > { %v1187_v0 = vadd.f32 %v1186_v43, %v1185_v32 }
 0x45d   : > { %v1188_v28 = vrot.slane %v1187_v0, 2 }
 0x45f   : > { %v1189_v19 = vadd.f32 %v1188_v28, %v1187_v0 }
 0x461   : > { %v1190_v1 = vrot.slane %v1189_v19, 1 }
 0x463   : > { %v1191_v36 = vadd.f32 %v1190_v1, %v1189_v19 }
 0x465   : > { %v1217_v48 = vsel %vm991_vm7, %v1191_v36, %v1216_v16 }
 0x466   : > { %v1218_v20 = vsel %vm993_vm8, %v1200_v41, %v1217_v48 }
 0x467   : > { %2324 = vmatmul.msk.f32.vlgmr.msrb.gmra.mxu3 %vm601_vm0, %v1218_v20 }
 0x468   : > { %2105 = vmatpush.msrb.mxu3 %v3417_v22 }
 0x46a   : > { %2106 = vmatpush.msrb.mxu3 %v3419_v21 }
 0x46c   : > { %2107 = vmatpush.msrb.mxu3 %v3442_v59 }
 0x46e   : > { %2108 = vmatpush.msrb.mxu3 %v3444_v62 }
 0x4ea   : > { %v1238_v11 = vpop.f32.mrf.mxu3 }
 0x4eb   : > { %v1239_v13 = vadd.f32 %v3483_v3, %v1238_v11 }
 0x4ed   : > { %v1241_v40 = vadd.f32 %v1239_v13, %v3193_v44 }
 0x4ef   : > { %2325 = vmatmul.msk.f32.vlgmr.msra.gmra.mxu1 %vm601_vm0, %v1241_v40 }
 0x56c   : > { %v1262_v60 = vpop.f32.mrf.mxu1 }
 0x56d   : > { %v3489_v22 = vadd.f32 %v3184_v38, %v1262_v60 }
 0x56f   : > { %2326 = vmatmul.msk.f32.vlgmr.msra.gmra.mxu2 %vm601_vm0, %v3489_v22 }
 0x5f2   : > { %v1285_v21 = vpop.f32.mrf.mxu2 }
 0x5f3   : > { %v1286_v59 = vadd.f32 %v3278_v35, %v1285_v21 }
 0x5f5   : > { %1290 = vperm.xlu2 %2452, %v1286_v59  }
 0x64f   : > { %v3494_v62 = vpop.permute.xlu2 %1290 }
 0x650   : > { %v1293_v32 = vperm.slane %v3494_v62, 1  ;;  %v1292_v7 = vperm.slane %v3494_v62, 0  ;;  %v1294_v58 = vperm.slane %v3494_v62, 2  ;;  %v1295_v12 = vperm.slane %v3494_v62, 3 }
 0x651   : > { %v1296_v29 = vperm.slane %v3494_v62, 4  ;;  %v1297_v63 = vperm.slane %v3494_v62, 5  ;;  %v1298_v1 = vperm.slane %v3494_v62, 6  ;;  %v1299_v20 = vperm.slane %v3494_v62, 7 }
 0x652   : > { %v1310_v44 = vadd.f32 %v1293_v32, %v3305_v56  ;;  %v1309_v42 = vadd.f32 %v1292_v7, %v3291_v49  ;;  %v1308_v38 = vadd.f32 %v1292_v7, %v3303_v31  ;;  %v1312_v35 = vadd.f32 %v1294_v58, %v3318_v2 }
 0x653   : > { %v1314_v43 = vadd.f32 %v1295_v12, %v3327_v17  ;;  %v1311_v45 = vadd.f32 %v1293_v32, %v3307_v57  ;;  %v1315_v54 = vadd.f32 %v1295_v12, %v3287_v46  ;;  %v1317_v4 = vadd.f32 %v1296_v29, %v3295_v52 }
 0x654   : > { %2521 = vtanh.f32 %v1310_v44  ;;  %v1313_v23 = vadd.f32 %v1294_v58, %v3321_v8  ;;  %v1318_v33 = vadd.f32 %v1297_v63, %v3297_v53  ;;  %v1320_v15 = vadd.f32 %v1298_v1, %v3293_v51 }
 0x655   : > { %2523 = vtanh.f32 %v1309_v42  ;;  %v1316_v41 = vadd.f32 %v1296_v29, %v3289_v47  ;;  %v1321_v11 = vadd.f32 %v1298_v1, %v3299_v30  ;;  %v1323_v13 = vadd.f32 %v1299_v20, %v3342_v10 }
 0x656   : > { %2525 = vtanh.f32 %v1308_v38  ;;  %v1319_v60 = vadd.f32 %v1297_v63, %v3312_v61  ;;  %v1322_v7 = vadd.f32 %v1299_v20, %v3301_v55 }
 0x657   : > { %2527 = vtanh.f32 %v1312_v35 }
 0x658   : > { %2529 = vtanh.f32 %v1314_v43 }
 0x659   : > { %2531 = vtanh.f32 %v1311_v45 }
 0x65a   : > { %v2522_v14 = vpop.eup %2521  ;;  %2533 = vtanh.f32 %v1315_v54 }
 0x65b   : > { %v2524_v0 = vpop.eup %2523  ;;  %1363 = vperm.xlu2 %2452, %v2522_v14   ;;  %2535 = vtanh.f32 %v1317_v4 }
 0x65c   : > { %v2526_v18 = vpop.eup %2525  ;;  %1360 = vperm.xlu0 %2454, %v2524_v0   ;;  %2537 = vtanh.f32 %v1313_v23 }
 0x65d   : > { %1357 = vperm.xlu1 %2453, %v2526_v18   ;;  %v2528_v28 = vpop.eup %2527  ;;  %2539 = vtanh.f32 %v1318_v33 }
 0x65e   : > { %v2530_v19 = vpop.eup %2529  ;;  %2541 = vtanh.f32 %v1320_v15 }
 0x65f   : > { %v2532_v37 = vpop.eup %2531  ;;  %2543 = vtanh.f32 %v1316_v41 }
 0x660   : > { %v2534_v36 = vpop.eup %2533  ;;  %2545 = vtanh.f32 %v1321_v11 }
 0x661   : > { %v2536_v16 = vpop.eup %2535  ;;  %2547 = vtanh.f32 %v1323_v13 }
 0x662   : > { %v2538_v48 = vpop.eup %2537  ;;  %2549 = vtanh.f32 %v1319_v60 }
 0x663   : > { %1369 = vperm.xlu2 %2452, %v2528_v28   ;;  %v2540_v40 = vpop.eup %2539  ;;  %2551 = vtanh.f32 %v1322_v7 }
 0x664   : > { %1375 = vperm.xlu0 %2454, %v2530_v19   ;;  %v2542_v21 = vpop.eup %2541 }
 0x665   : > { %1366 = vperm.xlu1 %2453, %v2532_v37   ;;  %v2544_v59 = vpop.eup %2543 }
 0x666   : > { %v2546_v32 = vpop.eup %2545 }
 0x667   : > { %v2548_v62 = vpop.eup %2547 }
 0x668   : > { %v2550_v44 = vpop.eup %2549 }
 0x669   : > { %v2552_v42 = vpop.eup %2551 }
 0x66b   : > { %1378 = vperm.xlu2 %2452, %v2534_v36  }
 0x66c   : > { %1384 = vperm.xlu0 %2454, %v2536_v16  }
 0x66d   : > { %1372 = vperm.xlu1 %2453, %v2538_v48  }
 0x673   : > { %1387 = vperm.xlu2 %2452, %v2540_v40  }
 0x674   : > { %1393 = vperm.xlu0 %2454, %v2542_v21  }
 0x675   : > { %1381 = vperm.xlu1 %2453, %v2544_v59  }
 0x67b   : > { %1396 = vperm.xlu2 %2452, %v2546_v32  }
 0x67c   : > { %1402 = vperm.xlu0 %2454, %v2548_v62  }
 0x67d   : > { %1390 = vperm.xlu1 %2453, %v2550_v44  }
 0x683   : > { %2458 = vset.pattern.permute.xlu2 %v3398_v27 }
 0x684   : > { %2455 = vset.pattern.permute.xlu0 %v3395_v25 }
 0x685   : > { %1399 = vperm.xlu1 %2453, %v2552_v42  }
 0x68d   : > { %2459 = vset.pattern.permute.xlu1 %v3395_v25 }
 0x6b5   : > { %v1364_v38 = vpop.permute.xlu2 %1363 }
 0x6b6   : > { %v1407_v19 = vperm.slane %v1364_v38, %v3346_v34 }
 0x6bd   : > { %v1370_v35 = vpop.permute.xlu2 %1369 }
 0x6be   : > { %v1410_v1 = vperm.slane %v1370_v35, %v3346_v34 }
 0x6c5   : > { %v1379_v0 = vpop.permute.xlu2 %1378 }
 0x6c6   : > { %v1414_v40 = vperm.slane %v1379_v0, %v3349_v39 }
 0x6cd   : > { %v1388_v54 = vpop.permute.xlu2 %1387 }
 0x6ce   : > { %v1361_v58 = vpop.permute.xlu0 %1360  ;;  %v1419_v60 = vperm.slane %v1388_v54, %v3346_v34 }
 0x6cf   : > { %v1358_v12 = vpop.permute.xlu1 %1357  ;;  %v1405_v37 = vperm.slane %v1361_v58, %v3349_v39 }
 0x6d0   : > { %v1404_v63 = vperm.slane %v1358_v12, %v3346_v34 }
 0x6d2   : > { %v1406_v16 = vsel %vm958_vm1, %v1405_v37, %v1404_v63 }
 0x6d5   : > { %v1397_v32 = vpop.permute.xlu2 %1396 }
 0x6d6   : > { %v1376_v43 = vpop.permute.xlu0 %1375  ;;  %v1423_v12 = vperm.slane %v1397_v32, %v3349_v39 }
 0x6d7   : > { %v1367_v14 = vpop.permute.xlu1 %1366  ;;  %v1413_v48 = vperm.slane %v1376_v43, %v3346_v34 }
 0x6d8   : > { %v1408_v4 = vperm.slane %v1367_v14, %v3349_v39 }
 0x6d9   : > { %v1415_v7 = vsel %vm958_vm1, %v1414_v40, %v1413_v48 }
 0x6da   : > { %v1409_v33 = vsel %vm958_vm1, %v1408_v4, %v1407_v19 }
 0x6db   : > { %v1428_v11 = vsel %vm981_vm2, %v1409_v33, %v1406_v16 }
 0x6de   : > { %v1385_v18 = vpop.permute.xlu0 %1384 }
 0x6df   : > { %v1373_v45 = vpop.permute.xlu1 %1372  ;;  %v1417_v13 = vperm.slane %v1385_v18, %v3349_v39 }
 0x6e0   : > { %v1411_v28 = vperm.slane %v1373_v45, %v3349_v39 }
 0x6e2   : > { %v1412_v15 = vsel %vm958_vm1, %v1411_v28, %v1410_v1 }
 0x6e3   : > { %v1429_v21 = vsel %vm983_vm3, %v1412_v15, %v1428_v11 }
 0x6e4   : > { %v1430_v42 = vsel %vm985_vm4, %v1415_v7, %v1429_v21 }
 0x6e6   : > { %v1394_v23 = vpop.permute.xlu0 %1393 }
 0x6e7   : > { %v1382_v29 = vpop.permute.xlu1 %1381  ;;  %v1422_v44 = vperm.slane %v1394_v23, %v3346_v34 }
 0x6e8   : > { %v1416_v36 = vperm.slane %v1382_v29, %v3346_v34 }
 0x6e9   : > { %v1424_v0 = vsel %vm958_vm1, %v1423_v12, %v1422_v44 }
 0x6ea   : > { %v1418_v59 = vsel %vm958_vm1, %v1417_v13, %v1416_v36 }
 0x6eb   : > { %v1431_v58 = vsel %vm987_vm5, %v1418_v59, %v1430_v42 }
 0x6ee   : > { %v1403_v38 = vpop.permute.xlu0 %1402 }
 0x6ef   : > { %v1391_v41 = vpop.permute.xlu1 %1390  ;;  %v1426_v14 = vperm.slane %v1403_v38, %v3349_v39 }
 0x6f0   : > { %v1420_v20 = vperm.slane %v1391_v41, %v3349_v39 }
 0x6f2   : > { %v1421_v62 = vsel %vm958_vm1, %v1420_v20, %v1419_v60  ;;  %v3857_v60 = vmov 0  }
 0x6f3   : > { %v1432_v43 = vsel %vm989_vm6, %v1421_v62, %v1431_v58 }
 0x6f4   : > { %v1433_v29 = vsel %vm991_vm7, %v1424_v0, %v1432_v43 }
 0x6f7   : > { %v1400_v35 = vpop.permute.xlu1 %1399 }
 0x6f8   : > { %v1425_v45 = vperm.slane %v1400_v35, %v3346_v34 }
 0x6fa   : > { %v1427_v18 = vsel %vm958_vm1, %v1426_v14, %v1425_v45 }
 0x6fb   : > { %v1434_v54 = vsel %vm993_vm8, %v1427_v18, %v1433_v29  ;;  %v3858_v29 = vld [vmem:[#allocation26_spill] sm:$0xff] }
 0x6fc   : > { %v1436_v4 = vsel %vm3382_vm9, %v1434_v54, -1e+30 }
 0x6fd   : > { %v1437_v28 = vsel %vm997_vm10, %v1436_v4, -inf }
 0x6fe   : > { %1438 = vmax.xlane.f32.xlu2 %v1437_v28 }
 0x771   : > { %v1439_v23 = vpop.xlane.xlu2 %1438 }
 0x772   : > { %v1440_v19 = vsub.f32 %v1436_v4, %v1439_v23  ;;  %v3859_v4 = vld [vmem:[#allocation34_spill] sm:$0xff] }
 0x774   : > { %v1441_v37 = vmul.f32 1.442695, %v1440_v19  ;;  %v3860_v19 = vld [vmem:[#allocation27_spill] sm:$0xff] }
 0x776   : > { %2553 = vpow2.f32 %v1441_v37 }
 0x77c   : > { %v2554_v63 = vpop.eup %2553 }
 0x77d   : > { %v1443_v1 = vsel %vm997_vm10, %v2554_v63, 0.0 }
 0x77e   : > { %1444 = vadd.xlane.f32.xlu1 %v1443_v1 }
 0x7f1   : > { %v1445_v33 = vpop.xlane.xlu1 %1444 }
 0x7f2   : > { %2555 = vrcp.f32 %v1445_v33 }
 0x7f8   : > { %v2556_v15 = vpop.eup %2555 }
 0x7f9   : > { %v1447_v36 = vmul.f32 %v2556_v15, %v2554_v63 }
 0x7fb   : > { %v1474_v41 = vperm.slane %v1447_v36, 2  ;;  %v1461_v16 = vperm.slane %v1447_v36, 1  ;;  %v1448_v48 = vperm.slane %v1447_v36, 0  ;;  %v1500_v20 = vperm.slane %v1447_v36, 4 }
 0x7fc   : > { %v1487_v11 = vperm.slane %v1447_v36, 3  ;;  %v1513_v13 = vperm.slane %v1447_v36, 5  ;;  %v1526_v40 = vperm.slane %v1447_v36, 6  ;;  %v1539_v21 = vperm.slane %v1447_v36, 7 }
 0x7fd   : > { %1479 = vperm.xlu1 %2459, %v1474_v41   ;;  %1472 = vperm.xlu2 %2458, %v1461_v16  }
 0x7fe   : > { %1453 = vperm.xlu0 %2455, %v1448_v48  }
 0x805   : > { %1505 = vperm.xlu1 %2459, %v1500_v20   ;;  %2461 = vset.pattern.permute.xlu2 %v3395_v25 }
 0x806   : > { %2456 = vset.pattern.permute.xlu0 %v3398_v27 }
 0x80d   : > { %2464 = vset.pattern.permute.xlu1 %v3398_v27  ;;  %1492 = vperm.xlu2 %2461, %v1487_v11  }
 0x80e   : > { %1459 = vperm.xlu0 %2456, %v1448_v48  }
 0x815   : > { %1524 = vperm.xlu1 %2464, %v1513_v13   ;;  %2462 = vset.pattern.permute.xlu2 %v3398_v27 }
 0x816   : > { %2457 = vset.pattern.permute.xlu0 %v3395_v25 }
 0x81d   : > { %1537 = vperm.xlu1 %2464, %v1526_v40   ;;  %1511 = vperm.xlu2 %2462, %v1500_v20   ;;  %v3862_v20 = vld [vmem:[#allocation30_spill] sm:$0xff] }
 0x81e   : > { %1466 = vperm.xlu0 %2457, %v1461_v16   ;;  %v3861_v16 = vld [vmem:[#allocation28_spill] sm:$0xff] }
 0x825   : > { %2465 = vset.pattern.permute.xlu2 %v3395_v25  ;;  %2467 = vset.pattern.permute.xlu1 %v3857_v60 }
 0x826   : > { %2460 = vset.pattern.permute.xlu0 %v3398_v27 }
 0x82d   : > { %1531 = vperm.xlu2 %2465, %v1526_v40  }
 0x82e   : > { %1485 = vperm.xlu0 %2460, %v1474_v41  }
 0x835   : > { %1544 = vperm.xlu2 %2465, %v1539_v21  }
 0x836   : > { %1498 = vperm.xlu0 %2460, %v1487_v11  }
 0x83d   : > { %2468 = vset.pattern.permute.xlu2 %v3857_v60 }
 0x83e   : > { %2463 = vset.pattern.permute.xlu0 %v3395_v25 }
 0x846   : > { %1518 = vperm.xlu0 %2463, %v1513_v13  }
 0x84e   : > { %2466 = vset.pattern.permute.xlu0 %v3398_v27 }
 0x856   : > { %1550 = vperm.xlu0 %2466, %v1539_v21  }
 0x857   : > { %v1473_v44 = vpop.permute.xlu2 %1472 }
 0x858   : > { %v1555_v45 = vmul.f32 %v1473_v44, %v3237_v6 }
 0x85a   : > { %v1578_v33 = vsel %vm601_vm0, %v1555_v45, 0.0 }
 0x85e   : > { %2469 = vset.pattern.permute.xlu0 %v3857_v60 }
 0x867   : > { %v1493_v58 = vpop.permute.xlu2 %1492 }
 0x868   : > { %v1558_v23 = vmul.f32 %v1493_v58, %v3267_v26 }
 0x86a   : > { %v1595_v40 = vsel %vm601_vm0, %v1558_v23, 0.0  ;;  %v3866_v23 = vld [vmem:[#allocation29_spill] sm:$0xff] }
 0x86f   : > { %v1480_v7 = vpop.permute.xlu1 %1479 }
 0x870   : > { %v1454_v59 = vpop.permute.xlu0 %1453  ;;  %v1556_v28 = vmul.f32 %v1480_v7, %v3859_v4 }
 0x871   : > { %v1552_v37 = vmul.f32 %v1454_v59, %v3860_v19 }
 0x872   : > { %v1586_v41 = vsel %vm601_vm0, %v1556_v28, 0.0 }
 0x873   : > { %v1568_v60 = vsel %vm601_vm0, %v1552_v37, 0.0 }
 0x877   : > { %v1506_v38 = vpop.permute.xlu1 %1505  ;;  %v1512_v0 = vpop.permute.xlu2 %1511 }
 0x878   : > { %v1560_v48 = vmul.f32 %v1506_v38, %v3861_v16  ;;  %v1561_v11 = vmul.f32 %v1512_v0, %v3862_v20 }
 0x87a   : > { %v1604_v58 = vsel %vm601_vm0, %v1560_v48, 0.0 }
 0x880   : > { %v1460_v32 = vpop.permute.xlu0 %1459 }
 0x881   : > { %v1553_v18 = vmul.f32 %v1460_v32, %v3204_v50 }
 0x883   : > { %v1569_v15 = vsel %vm601_vm0, %v1553_v18, 0.0  ;;  %v3865_v18 = vld [vmem:[#allocation31_spill] sm:$0xff] }
 0x884   : > { %v1570_v32 = vadd.f32 %v1569_v15, %v1568_v60 }
 0x886   : > { %v1571_v28 = vrot.slane %v1570_v32, 4 }
 0x887   : > { %v1525_v12 = vpop.permute.xlu1 %1524 }
 0x88f   : > { %v1538_v21 = vpop.permute.xlu1 %1537 }
 0x890   : > { %v1467_v62 = vpop.permute.xlu0 %1466 }
 0x891   : > { %v1554_v43 = vmul.f32 %v1467_v62, %v3234_v5  ;;  %v3863_v62 = vld [vmem:[#allocation35_spill] sm:$0xff] }
 0x892   : > { %v1563_v44 = vmul.f32 %v1525_v12, %v3863_v62 }
 0x893   : > { %v1577_v63 = vsel %vm601_vm0, %v1554_v43, 0.0  ;;  %v3864_v43 = vld [vmem:[#allocation32_spill] sm:$0xff] }
 0x894   : > { %v1579_v13 = vadd.f32 %v1578_v33, %v1577_v63  ;;  %v1565_v38 = vmul.f32 %v1538_v21, %v3864_v43  ;;  %v1614_v33 = vsel %vm601_vm0, %v1563_v44, 0.0 }
 0x896   : > { %v1623_v15 = vsel %vm601_vm0, %v1565_v38, 0.0 }
 0x8a0   : > { %v1486_v42 = vpop.permute.xlu0 %1485 }
 0x8a1   : > { %v1557_v14 = vmul.f32 %v1486_v42, %v3264_v24  ;;  %v1532_v42 = vpop.permute.xlu2 %1531 }
 0x8a2   : > { %v1564_v37 = vmul.f32 %v1532_v42, %v3866_v23 }
 0x8a3   : > { %v1587_v1 = vsel %vm601_vm0, %v1557_v14, 0.0  ;;  %v1580_v14 = vrot.slane %v1579_v13, 4 }
 0x8a4   : > { %v1588_v59 = vadd.f32 %v1587_v1, %v1586_v41 }
 0x8a6   : > { %v1589_v0 = vrot.slane %v1588_v59, 4 }
 0x8a8   : > { %v1499_v35 = vpop.permute.xlu0 %1498  ;;  %v1590_v48 = vadd.f32 %v1589_v0, %v1588_v59 }
 0x8a9   : > { %v1559_v54 = vmul.f32 %v1499_v35, %v3858_v29  ;;  %v1605_v35 = vsel %vm601_vm0, %v1561_v11, 0.0  ;;  %v1572_v11 = vadd.f32 %v1571_v28, %v1570_v32  ;;  %v3867_v28 = vld [vmem:[#allocation33_spill] sm:$0xff] }
 0x8aa   : > { %v1606_v1 = vadd.f32 %v1605_v35, %v1604_v58  ;;  %v1591_v42 = vrot.slane %v1590_v48, 2 }
 0x8ab   : > { %v1596_v36 = vsel %vm601_vm0, %v1559_v54, 0.0  ;;  %v1573_v23 = vrot.slane %v1572_v11, 2 }
 0x8ac   : > { %v1597_v7 = vadd.f32 %v1596_v36, %v1595_v40  ;;  %v1581_v36 = vadd.f32 %v1580_v14, %v1579_v13  ;;  %v1622_v40 = vsel %vm601_vm0, %v1564_v37, 0.0  ;;  %v1592_v38 = vadd.f32 %v1591_v42, %v1590_v48 }
 0x8ad   : > { %v1624_v43 = vadd.f32 %v1623_v15, %v1622_v40  ;;  %v1574_v13 = vadd.f32 %v1573_v23, %v1572_v11 }
 0x8ae   : > { %v1598_v63 = vrot.slane %v1597_v7, 4  ;;  %v1582_v62 = vrot.slane %v1581_v36, 2 }
 0x8af   : > { %v1575_v40 = vrot.slane %v1574_v13, 1 }
 0x8b0   : > { %v1599_v60 = vadd.f32 %v1598_v63, %v1597_v7  ;;  %v1583_v16 = vadd.f32 %v1582_v62, %v1581_v36 }
 0x8b2   : > { %v1600_v58 = vrot.slane %v1599_v60, 2  ;;  %v1584_v37 = vrot.slane %v1583_v16, 1 }
 0x8b4   : > { %v1601_v14 = vadd.f32 %v1600_v58, %v1599_v60  ;;  %v1585_v36 = vadd.f32 %v1584_v37, %v1583_v16 }
 0x8b6   : > { %v1602_v29 = vrot.slane %v1601_v14, 1 }
 0x8b8   : > { %v1519_v45 = vpop.permute.xlu0 %1518 }
 0x8b9   : > { %v1562_v54 = vmul.f32 %v1519_v45, %v3865_v18  ;;  %v1607_v45 = vrot.slane %v1606_v1, 4  ;;  %v1625_v18 = vrot.slane %v1624_v43, 4 }
 0x8bb   : > { %v1613_v12 = vsel %vm601_vm0, %v1562_v54, 0.0  ;;  %v1608_v44 = vadd.f32 %v1607_v45, %v1606_v1  ;;  %v1545_v54 = vpop.permute.xlu2 %1544  ;;  %v1626_v0 = vadd.f32 %v1625_v18, %v1624_v43  ;;  %v1576_v43 = vadd.f32 %v1575_v40, %v1574_v13 }
 0x8bc   : > { %v1615_v41 = vadd.f32 %v1614_v33, %v1613_v12  ;;  %v1566_v7 = vmul.f32 %v1545_v54, %v3867_v28  ;;  %v1593_v33 = vrot.slane %v1592_v38, 1  ;;  %v3868_v12 = vld [vmem:[#allocation36_spill] sm:$0xff]  ;;  %v1603_v18 = vadd.f32 %v1602_v29, %v1601_v14 }
 0x8bd   : > { %v1609_v32 = vrot.slane %v1608_v44, 2  ;;  %v1648_v54 = vsel %vm981_vm2, %v1585_v36, %v1576_v43 }
 0x8be   : > { %v1616_v21 = vrot.slane %v1615_v41, 4  ;;  %v1631_v62 = vsel %vm601_vm0, %v1566_v7, 0.0  ;;  %v1594_v11 = vadd.f32 %v1593_v33, %v1592_v38 }
 0x8bf   : > { %v1610_v1 = vadd.f32 %v1609_v32, %v1608_v44 }
 0x8c0   : > { %v1617_v35 = vadd.f32 %v1616_v21, %v1615_v41  ;;  %v1627_v21 = vrot.slane %v1626_v0, 2 }
 0x8c1   : > { %v1611_v42 = vrot.slane %v1610_v1, 1 }
 0x8c2   : > { %v1618_v59 = vrot.slane %v1617_v35, 2  ;;  %v1628_v58 = vadd.f32 %v1627_v21, %v1626_v0 }
 0x8c3   : > { %v1612_v7 = vadd.f32 %v1611_v42, %v1610_v1 }
 0x8c4   : > { %v1619_v41 = vadd.f32 %v1618_v59, %v1617_v35  ;;  %v1649_v35 = vsel %vm983_vm3, %v1594_v11, %v1648_v54 }
 0x8c5   : > { %v1650_v44 = vsel %vm985_vm4, %v1603_v18, %v1649_v35 }
 0x8c6   : > { %v1620_v60 = vrot.slane %v1619_v41, 1  ;;  %v1651_v38 = vsel %vm987_vm5, %v1612_v7, %v1650_v44 }
 0x8c8   : > { %v1551_v63 = vpop.permute.xlu0 %1550  ;;  %v1621_v59 = vadd.f32 %v1620_v60, %v1619_v41 }
 0x8c9   : > { %v1567_v15 = vmul.f32 %v1551_v63, %v3868_v12 }
 0x8ca   : > { %v1652_v29 = vsel %vm989_vm6, %v1621_v59, %v1651_v38 }
 0x8cb   : > { %v1632_v23 = vsel %vm601_vm0, %v1567_v15, 0.0  ;;  %v1629_v15 = vrot.slane %v1628_v58, 1 }
 0x8cc   : > { %v1633_v48 = vadd.f32 %v1632_v23, %v1631_v62  ;;  %v2597_v62 = vld [vmem:[%s3777_s4] ss:$0 sm:$0xff] }
 0x8cd   : > { %v1630_v14 = vadd.f32 %v1629_v15, %v1628_v58 }
 0x8ce   : > { %v1634_v45 = vrot.slane %v1633_v48, 4 }
 0x8cf   : > { %v1653_v0 = vsel %vm991_vm7, %v1630_v14, %v1652_v29 }
 0x8d0   : > { %v1635_v63 = vadd.f32 %v1634_v45, %v1633_v48  ;;  %v2598_v48 = vld [vmem:[#allocation4] ss:$0 sm:$0xff] }
 0x8d2   : > { %v1636_v32 = vrot.slane %v1635_v63, 2 }
 0x8d4   : > { %v1637_v16 = vadd.f32 %v1636_v32, %v1635_v63 }
 0x8d6   : > { %v1638_v13 = vrot.slane %v1637_v16, 1 }
 0x8d8   : > { %v1639_v37 = vadd.f32 %v1638_v13, %v1637_v16 }
 0x8da   : > { %v1654_v33 = vsel %vm993_vm8, %v1639_v37, %v1653_v0 }
 0x8db   : > { %2327 = vmatmul.msk.f32.vlgmr.msra.gmra.mxu3 %vm601_vm0, %v1654_v33 }
 0x95e   : > { %v1674_v40 = vpop.f32.mrf.mxu3 }
 0x95f   : > { %v1675_v41 = vadd.f32 %v3483_v3, %v1674_v40 }
 0x961   : > { %v1677_v1 = vadd.f32 %v1675_v41, %v3489_v22 }
 0x963   : > { %2328 = vmatmul.msk.f32.vlgmr.msrb.gmra.mxu1 %vm601_vm0, %v1677_v1 }
 0x9e0   : > { %v1698_v21 = vpop.f32.mrf.mxu1 }
 0x9e1   : > { %v3616_v23 = vadd.f32 %v2597_v62, %v1698_v21 }
 0x9e3   : > { %2329 = vmatmul.msk.f32.vlgmr.msrb.gmra.mxu2 %vm601_vm0, %v3616_v23 }
 0xa66   : > { %v1721_v36 = vpop.f32.mrf.mxu2 }
 0xa67   : > { %v1722_v11 = vadd.f32 %v2598_v48, %v1721_v36 }
 0xa69   : > { %1726 = vperm.xlu1 %2467, %v1722_v11  }
 0xadb   : > { %v3620_v43 = vpop.permute.xlu1 %1726 }
 0xadc   : > { %v1729_v3 = vperm.slane %v3620_v43, 1  ;;  %v1728_v22 = vperm.slane %v3620_v43, 0  ;;  %v1732_v42 = vperm.slane %v3620_v43, 4  ;;  %v1730_v58 = vperm.slane %v3620_v43, 2 }
 0xadd   : > { %v1735_v16 = vperm.slane %v3620_v43, 7  ;;  %v1734_v14 = vperm.slane %v3620_v43, 6 }
 0xade   : > { %v1747_v18 = vadd.f32 %v1729_v3, %v3307_v57  ;;  %v1745_v60 = vadd.f32 %v1728_v22, %v3291_v49  ;;  %v1744_v45 = vadd.f32 %v1728_v22, %v3303_v31  ;;  %v1752_v54 = vadd.f32 %v1732_v42, %v3289_v47 }
 0xadf   : > { %v1748_v63 = vadd.f32 %v1730_v58, %v3318_v2  ;;  %v1746_v44 = vadd.f32 %v1729_v3, %v3305_v56  ;;  %v1733_v49 = vperm.slane %v3620_v43, 5  ;;  %v1731_v31 = vperm.slane %v3620_v43, 3 }
 0xae0   : > { %2557 = vtanh.f32 %v1747_v18  ;;  %v1749_v7 = vadd.f32 %v1730_v58, %v3321_v8  ;;  %v1758_v38 = vadd.f32 %v1735_v16, %v3301_v55  ;;  %v1753_v13 = vadd.f32 %v1732_v42, %v3295_v52 }
 0xae1   : > { %2559 = vtanh.f32 %v1745_v60  ;;  %v1755_v32 = vadd.f32 %v1733_v49, %v3312_v61  ;;  %v1750_v47 = vadd.f32 %v1731_v31, %v3327_v17  ;;  %v1751_v17 = vadd.f32 %v1731_v31, %v3287_v46 }
 0xae2   : > { %2561 = vtanh.f32 %v1744_v45  ;;  %v1756_v37 = vadd.f32 %v1734_v14, %v3293_v51  ;;  %v1754_v55 = vadd.f32 %v1733_v49, %v3297_v53  ;;  %v1759_v46 = vadd.f32 %v1735_v16, %v3342_v10 }
 0xae3   : > { %2563 = vtanh.f32 %v1752_v54  ;;  %v1757_v40 = vadd.f32 %v1734_v14, %v3299_v30 }
 0xae4   : > { %2565 = vtanh.f32 %v1748_v63 }
 0xae5   : > { %2567 = vtanh.f32 %v1746_v44 }
 0xae6   : > { %v2558_v35 = vpop.eup %2557  ;;  %2569 = vtanh.f32 %v1755_v32 }
 0xae7   : > { %v2560_v59 = vpop.eup %2559  ;;  %1802 = vperm.xlu0 %2469, %v2558_v35   ;;  %2571 = vtanh.f32 %v1750_v47 }
 0xae8   : > { %v2562_v57 = vpop.eup %2561  ;;  %1796 = vperm.xlu1 %2467, %v2560_v59   ;;  %2573 = vtanh.f32 %v1749_v7 }
 0xae9   : > { %1793 = vperm.xlu2 %2468, %v2562_v57   ;;  %v2564_v2 = vpop.eup %2563  ;;  %2575 = vtanh.f32 %v1758_v38 }
 0xaea   : > { %v2566_v56 = vpop.eup %2565  ;;  %2577 = vtanh.f32 %v1753_v13 }
 0xaeb   : > { %v2568_v15 = vpop.eup %2567  ;;  %2579 = vtanh.f32 %v1751_v17 }
 0xaec   : > { %v2570_v61 = vpop.eup %2569  ;;  %2581 = vtanh.f32 %v1756_v37 }
 0xaed   : > { %v2572_v29 = vpop.eup %2571  ;;  %2583 = vtanh.f32 %v1754_v55 }
 0xaee   : > { %v2574_v8 = vpop.eup %2573  ;;  %2585 = vtanh.f32 %v1759_v46 }
 0xaef   : > { %1817 = vperm.xlu0 %2469, %v2564_v2   ;;  %v2576_v0 = vpop.eup %2575  ;;  %2587 = vtanh.f32 %v1757_v40 }
 0xaf0   : > { %1805 = vperm.xlu1 %2467, %v2566_v56   ;;  %v2578_v33 = vpop.eup %2577 }
 0xaf1   : > { %1799 = vperm.xlu2 %2468, %v2568_v15   ;;  %v2580_v52 = vpop.eup %2579 }
 0xaf2   : > { %v2582_v41 = vpop.eup %2581 }
 0xaf3   : > { %v2584_v1 = vpop.eup %2583 }
 0xaf4   : > { %v2586_v51 = vpop.eup %2585 }
 0xaf5   : > { %v2588_v53 = vpop.eup %2587 }
 0xaf7   : > { %1826 = vperm.xlu0 %2469, %v2570_v61  }
 0xaf8   : > { %1811 = vperm.xlu1 %2467, %v2572_v29  }
 0xaf9   : > { %1808 = vperm.xlu2 %2468, %v2574_v8  }
 0xaff   : > { %1835 = vperm.xlu0 %2469, %v2576_v0  }
 0xb00   : > { %1820 = vperm.xlu1 %2467, %v2578_v33  }
 0xb01   : > { %1814 = vperm.xlu2 %2468, %v2580_v52  }
 0xb07   : > { %2476 = vset.pattern.permute.xlu0 %v3398_v27 }
 0xb08   : > { %1829 = vperm.xlu1 %2467, %v2582_v41  }
 0xb09   : > { %1823 = vperm.xlu2 %2468, %v2584_v1  }
 0xb10   : > { %1838 = vperm.xlu1 %2467, %v2586_v51  }
 0xb11   : > { %1832 = vperm.xlu2 %2468, %v2588_v53  }
 0xb18   : > { %2470 = vset.pattern.permute.xlu1 %v3395_v25 }
 0xb19   : > { %2475 = vset.pattern.permute.xlu2 %v3398_v27 }
 0xb43   : > { %v1794_v21 = vpop.permute.xlu2 %1793 }
 0xb44   : > { %v1840_v54 = vperm.slane %v1794_v21, %v3346_v34 }
 0xb4b   : > { %v1800_v10 = vpop.permute.xlu2 %1799 }
 0xb4c   : > { %v1843_v63 = vperm.slane %v1800_v10, %v3346_v34 }
 0xb53   : > { %v1809_v30 = vpop.permute.xlu2 %1808 }
 0xb54   : > { %v1847_v44 = vperm.slane %v1809_v30, %v3349_v39 }
 0xb59   : > { %v1803_v36 = vpop.permute.xlu0 %1802 }
 0xb5a   : > { %v1797_v62 = vpop.permute.xlu1 %1796  ;;  %v1844_v45 = vperm.slane %v1803_v36, %v3349_v39 }
 0xb5b   : > { %v1815_v11 = vpop.permute.xlu2 %1814  ;;  %v1841_v42 = vperm.slane %v1797_v62, %v3349_v39 }
 0xb5c   : > { %v1845_v49 = vsel %vm958_vm1, %v1844_v45, %v1843_v63  ;;  %v1850_v32 = vperm.slane %v1815_v11, %v3349_v39 }
 0xb5d   : > { %v1842_v31 = vsel %vm958_vm1, %v1841_v42, %v1840_v54 }
 0xb5e   : > { %v1864_v15 = vsel %vm981_vm2, %v1845_v49, %v1842_v31 }
 0xb61   : > { %v1818_v3 = vpop.permute.xlu0 %1817 }
 0xb62   : > { %v1806_v48 = vpop.permute.xlu1 %1805  ;;  %v1852_v47 = vperm.slane %v1818_v3, %v3346_v34 }
 0xb63   : > { %v1824_v18 = vpop.permute.xlu2 %1823  ;;  %v1846_v58 = vperm.slane %v1806_v48, %v3346_v34 }
 0xb64   : > { %v1855_v14 = vperm.slane %v1824_v18, %v3346_v34 }
 0xb65   : > { %v1848_v2 = vsel %vm958_vm1, %v1847_v44, %v1846_v58 }
 0xb66   : > { %v1865_v13 = vsel %vm983_vm3, %v1848_v2, %v1864_v15 }
 0xb69   : > { %v1827_v60 = vpop.permute.xlu0 %1826 }
 0xb6a   : > { %v1812_v43 = vpop.permute.xlu1 %1811  ;;  %v1856_v61 = vperm.slane %v1827_v60, %v3349_v39 }
 0xb6b   : > { %v1849_v35 = vperm.slane %v1812_v43, %v3346_v34  ;;  %v1833_v56 = vpop.permute.xlu2 %1832 }
 0xb6c   : > { %v1859_v29 = vperm.slane %v1833_v56, %v3349_v39  ;;  %v1857_v33 = vsel %vm958_vm1, %v1856_v61, %v1855_v14  ;;  %v3869_v61 = vld [vmem:[#allocation26_spill] sm:$0xff]  ;;  %v3870_v14 = vld [vmem:[#allocation28_spill] sm:$0xff] }
 0xb6d   : > { %v1851_v7 = vsel %vm958_vm1, %v1850_v32, %v1849_v35 }
 0xb6e   : > { %v1866_v17 = vsel %vm985_vm4, %v1851_v7, %v1865_v13 }
 0xb71   : > { %v1836_v8 = vpop.permute.xlu0 %1835 }
 0xb72   : > { %v1821_v22 = vpop.permute.xlu1 %1820  ;;  %v1861_v52 = vperm.slane %v1836_v8, %v3346_v34 }
 0xb73   : > { %v1853_v59 = vperm.slane %v1821_v22, %v3349_v39 }
 0xb75   : > { %v1854_v16 = vsel %vm958_vm1, %v1853_v59, %v1852_v47 }
 0xb76   : > { %v1867_v37 = vsel %vm987_vm5, %v1854_v16, %v1866_v17 }
 0xb77   : > { %v1868_v40 = vsel %vm989_vm6, %v1857_v33, %v1867_v37 }
 0xb7a   : > { %v1830_v57 = vpop.permute.xlu1 %1829 }
 0xb7b   : > { %v1858_v38 = vperm.slane %v1830_v57, %v3346_v34 }
 0xb7d   : > { %v1860_v0 = vsel %vm958_vm1, %v1859_v29, %v1858_v38 }
 0xb7e   : > { %v1869_v1 = vsel %vm991_vm7, %v1860_v0, %v1868_v40 }
 0xb82   : > { %v1839_v55 = vpop.permute.xlu1 %1838 }
 0xb83   : > { %v1862_v46 = vperm.slane %v1839_v55, %v3349_v39 }
 0xb85   : > { %v1863_v41 = vsel %vm958_vm1, %v1862_v46, %v1861_v52  ;;  %v3872_v46 = vld [vmem:[#allocation35_spill] sm:$0xff] }
 0xb86   : > { %v1870_v51 = vsel %vm993_vm8, %v1863_v41, %v1869_v1 }
 0xb87   : > { %v1872_v53 = vsel %vm3382_vm9, %v1870_v51, -1e+30 }
 0xb88   : > { %v1873_v21 = vsel %vm997_vm10, %v1872_v53, -inf }
 0xb89   : > { %1874 = vmax.xlane.f32.xlu2 %v1873_v21 }
 0xbfc   : > { %v1875_v10 = vpop.xlane.xlu2 %1874 }
 0xbfd   : > { %v1876_v62 = vsub.f32 %v1872_v53, %v1875_v10 }
 0xbff   : > { %v1877_v30 = vmul.f32 1.442695, %v1876_v62  ;;  %v590_v62 = vld [vmem:[#allocation13 + $0x18] sm:$0xff] }
 0xc00   : > { %2132 = vmatpush.msra.mxu1 %v590_v62 }
 0xc01   : > { %2589 = vpow2.f32 %v1877_v30  ;;  %v589_v30 = vld [vmem:[#allocation13 + $0x10] sm:$0xff] }
 0xc02   : > { %2133 = vmatpush.msra.mxu1 %v589_v30 }
 0xc07   : > { %v2590_v34 = vpop.eup %2589 }
 0xc08   : > { %v1879_v39 = vsel %vm997_vm10, %v2590_v34, 0.0 }
 0xc09   : > { %1880 = vadd.xlane.f32.xlu0 %v1879_v39 }
 0xc7c   : > { %v1881_v36 = vpop.xlane.xlu0 %1880 }
 0xc7d   : > { %2591 = vrcp.f32 %v1881_v36 }
 0xc83   : > { %v2592_v48 = vpop.eup %2591 }
 0xc84   : > { %v1883_v11 = vmul.f32 %v2592_v48, %v2590_v34 }
 0xc86   : > { %v1923_v43 = vperm.slane %v1883_v11, 3  ;;  %v1910_v3 = vperm.slane %v1883_v11, 2  ;;  %v1884_v22 = vperm.slane %v1883_v11, 0  ;;  %v1949_v9 = vperm.slane %v1883_v11, 5 }
 0xc87   : > { %v1962_v18 = vperm.slane %v1883_v11, 6  ;;  %v1975_v60 = vperm.slane %v1883_v11, 7  ;;  %v1897_v45 = vperm.slane %v1883_v11, 1  ;;  %v1936_v42 = vperm.slane %v1883_v11, 4 }
 0xc88   : > { %1934 = vperm.xlu0 %2476, %v1923_v43   ;;  %1921 = vperm.xlu2 %2475, %v1910_v3  }
 0xc89   : > { %1889 = vperm.xlu1 %2470, %v1884_v22  }
 0xc90   : > { %2478 = vset.pattern.permute.xlu2 %v3395_v25 }
 0xc91   : > { %2471 = vset.pattern.permute.xlu1 %v3398_v27 }
 0xc98   : > { %1954 = vperm.xlu2 %2478, %v1949_v9  }
 0xc99   : > { %1895 = vperm.xlu1 %2471, %v1884_v22  }
 0xca0   : > { %1967 = vperm.xlu2 %2478, %v1962_v18  }
 0xca1   : > { %2472 = vset.pattern.permute.xlu1 %v3395_v25 }
 0xca8   : > { %1980 = vperm.xlu2 %2478, %v1975_v60  }
 0xca9   : > { %1902 = vperm.xlu1 %2472, %v1897_v45  }
 0xcb1   : > { %2473 = vset.pattern.permute.xlu1 %v3398_v27 }
 0xcb9   : > { %1908 = vperm.xlu1 %2473, %v1897_v45  }
 0xcc1   : > { %2474 = vset.pattern.permute.xlu1 %v3395_v25 }
 0xcc9   : > { %1915 = vperm.xlu1 %2474, %v1910_v3  }
 0xcd1   : > { %1928 = vperm.xlu1 %2474, %v1923_v43   ;;  %v3873_v43 = vld [vmem:[#allocation29_spill] sm:$0xff] }
 0xcd9   : > { %1941 = vperm.xlu1 %2474, %v1936_v42  }
 0xce1   : > { %2477 = vset.pattern.permute.xlu1 %v3398_v27 }
 0xce2   : > { %v1922_v27 = vpop.permute.xlu2 %1921 }
 0xce3   : > { %v1993_v38 = vmul.f32 %v1922_v27, %v3264_v24 }
 0xce9   : > { %1947 = vperm.xlu1 %2477, %v1936_v42   ;;  %v3874_v42 = vld [vmem:[#allocation32_spill] sm:$0xff] }
 0xcf1   : > { %1960 = vperm.xlu1 %2477, %v1949_v9  }
 0xcf2   : > { %v1955_v2 = vpop.permute.xlu2 %1954 }
 0xcf9   : > { %1973 = vperm.xlu1 %2477, %v1962_v18  }
 0xcfa   : > { %v1935_v15 = vpop.permute.xlu0 %1934  ;;  %v1968_v41 = vpop.permute.xlu2 %1967 }
 0xcfb   : > { %v1890_v58 = vpop.permute.xlu1 %1889  ;;  %v1995_v17 = vmul.f32 %v1935_v15, %v3869_v61  ;;  %v2000_v3 = vmul.f32 %v1968_v41, %v3873_v43 }
 0xcfc   : > { %v1988_v54 = vmul.f32 %v1890_v58, %v3860_v19 }
 0xcfd   : > { %v2032_v33 = vsel %vm601_vm0, %v1995_v17, 0.0 }
 0xcfe   : > { %v2004_v44 = vsel %vm601_vm0, %v1988_v54, 0.0 }
 0xd01   : > { %1986 = vperm.xlu1 %2477, %v1975_v60  }
 0xd0b   : > { %v1896_v63 = vpop.permute.xlu1 %1895 }
 0xd0c   : > { %v1989_v35 = vmul.f32 %v1896_v63, %v3204_v50 }
 0xd0e   : > { %v2005_v25 = vsel %vm601_vm0, %v1989_v35, 0.0  ;;  %v2058_v35 = vsel %vm601_vm0, %v2000_v3, 0.0 }
 0xd0f   : > { %v2006_v59 = vadd.f32 %v2005_v25, %v2004_v44 }
 0xd11   : > { %v2007_v48 = vrot.slane %v2006_v59, 4 }
 0xd13   : > { %v2008_v54 = vadd.f32 %v2007_v48, %v2006_v59 }
 0xd1b   : > { %v1903_v57 = vpop.permute.xlu1 %1902 }
 0xd1c   : > { %v1990_v50 = vmul.f32 %v1903_v57, %v3234_v5  ;;  %v1981_v57 = vpop.permute.xlu2 %1980 }
 0xd2b   : > { %v1909_v49 = vpop.permute.xlu1 %1908 }
 0xd2c   : > { %v1991_v56 = vmul.f32 %v1909_v49, %v3237_v6  ;;  %v3871_v6 = vld [vmem:[#allocation31_spill] sm:$0xff] }
 0xd2d   : > { %v1998_v0 = vmul.f32 %v1955_v2, %v3871_v6 }
 0xd2e   : > { %v2014_v29 = vsel %vm601_vm0, %v1991_v56, 0.0  ;;  %v2002_v56 = vmul.f32 %v1981_v57, %v3867_v28 }
 0xd2f   : > { %v2049_v53 = vsel %vm601_vm0, %v1998_v0, 0.0 }
 0xd3b   : > { %v1916_v31 = vpop.permute.xlu1 %1915 }
 0xd3c   : > { %v1992_v19 = vmul.f32 %v1916_v31, %v3859_v4  ;;  %v2013_v4 = vsel %vm601_vm0, %v1990_v50, 0.0 }
 0xd3d   : > { %v2015_v55 = vadd.f32 %v2014_v29, %v2013_v4 }
 0xd3e   : > { %v2022_v8 = vsel %vm601_vm0, %v1992_v19, 0.0 }
 0xd3f   : > { %v2016_v34 = vrot.slane %v2015_v55, 4 }
 0xd41   : > { %v2017_v9 = vadd.f32 %v2016_v34, %v2015_v55 }
 0xd43   : > { %v1929_v32 = vpop.permute.xlu1 %1928  ;;  %v2018_v49 = vrot.slane %v2017_v9, 2 }
 0xd44   : > { %v1994_v16 = vmul.f32 %v1929_v32, %v3267_v26  ;;  %v2023_v26 = vsel %vm601_vm0, %v1993_v38, 0.0 }
 0xd45   : > { %v2024_v52 = vadd.f32 %v2023_v26, %v2022_v8  ;;  %v2019_v19 = vadd.f32 %v2018_v49, %v2017_v9  ;;  %v2067_v8 = vsel %vm601_vm0, %v2002_v56, 0.0  ;;  %v588_v9 = vld [vmem:[#allocation13 + $0x8] sm:$0xff] }
 0xd46   : > { %v2031_v5 = vsel %vm601_vm0, %v1994_v16, 0.0  ;;  %2134 = vmatpush.msra.mxu1 %v588_v9 }
 0xd47   : > { %v2033_v1 = vadd.f32 %v2032_v33, %v2031_v5  ;;  %v2025_v36 = vrot.slane %v2024_v52, 4  ;;  %v2020_v6 = vrot.slane %v2019_v19, 1 }
 0xd49   : > { %v2034_v11 = vrot.slane %v2033_v1, 4  ;;  %v2026_v45 = vadd.f32 %v2025_v36, %v2024_v52  ;;  %v2021_v33 = vadd.f32 %v2020_v6, %v2019_v19 }
 0xd4b   : > { %v1942_v47 = vpop.permute.xlu1 %1941  ;;  %v2035_v63 = vadd.f32 %v2034_v11, %v2033_v1  ;;  %v2027_v27 = vrot.slane %v2026_v45, 2 }
 0xd4c   : > { %v1996_v37 = vmul.f32 %v1942_v47, %v3870_v14  ;;  %v2009_v47 = vrot.slane %v2008_v54, 2 }
 0xd4d   : > { %v2036_v2 = vrot.slane %v2035_v63, 2  ;;  %v2028_v38 = vadd.f32 %v2027_v27, %v2026_v45  ;;  %v2599_v45 = vld [vmem:[%s3784_s11] ss:$0 sm:$0xff] }
 0xd4e   : > { %v2040_v51 = vsel %vm601_vm0, %v1996_v37, 0.0  ;;  %v2010_v61 = vadd.f32 %v2009_v47, %v2008_v54  ;;  %v2484_v54 = vld [vmem:[%s3875_s16] ss:$0 sm:$0xff] }
 0xd4f   : > { %v2037_v17 = vadd.f32 %v2036_v2, %v2035_v63  ;;  %v2029_v28 = vrot.slane %v2028_v38, 1 }
 0xd50   : > { %v2011_v26 = vrot.slane %v2010_v61, 1 }
 0xd51   : > { %v2038_v55 = vrot.slane %v2037_v17, 1 }
 0xd52   : > { %v2012_v41 = vadd.f32 %v2011_v26, %v2010_v61 }
 0xd53   : > { %v2039_v1 = vadd.f32 %v2038_v55, %v2037_v17 }
 0xd5b   : > { %v1948_v7 = vpop.permute.xlu1 %1947 }
 0xd5c   : > { %v1997_v13 = vmul.f32 %v1948_v7, %v3862_v20 }
 0xd5e   : > { %v2041_v24 = vsel %vm601_vm0, %v1997_v13, 0.0 }
 0xd5f   : > { %v2042_v21 = vadd.f32 %v2041_v24, %v2040_v51 }
 0xd61   : > { %v2043_v22 = vrot.slane %v2042_v21, 4 }
 0xd63   : > { %v1961_v20 = vpop.permute.xlu1 %1960  ;;  %v2044_v44 = vadd.f32 %v2043_v22, %v2042_v21  ;;  %v2084_v21 = vsel %vm981_vm2, %v2021_v33, %v2012_v41 }
 0xd64   : > { %v1999_v40 = vmul.f32 %v1961_v20, %v3872_v46  ;;  %v2030_v46 = vadd.f32 %v2029_v28, %v2028_v38 }
 0xd65   : > { %v2045_v15 = vrot.slane %v2044_v44, 2 }
 0xd66   : > { %v2050_v10 = vsel %vm601_vm0, %v1999_v40, 0.0  ;;  %v2085_v30 = vsel %vm983_vm3, %v2030_v46, %v2084_v21 }
 0xd67   : > { %v2051_v39 = vadd.f32 %v2050_v10, %v2049_v53  ;;  %v2046_v14 = vadd.f32 %v2045_v15, %v2044_v44 }
 0xd69   : > { %v2052_v18 = vrot.slane %v2051_v39, 4  ;;  %v2047_v20 = vrot.slane %v2046_v14, 1 }
 0xd6b   : > { %v1974_v60 = vpop.permute.xlu1 %1973  ;;  %v2053_v31 = vadd.f32 %v2052_v18, %v2051_v39  ;;  %v2048_v53 = vadd.f32 %v2047_v20, %v2046_v14  ;;  %v2086_v39 = vsel %vm985_vm4, %v2039_v1, %v2085_v30  ;;  %v587_v18 = vld [vmem:[#allocation13] sm:$0xff] }
 0xd6c   : > { %v2001_v58 = vmul.f32 %v1974_v60, %v3874_v42  ;;  %2135 = vmatpush.msra.mxu1 %v587_v18 }
 0xd6d   : > { %v2054_v50 = vrot.slane %v2053_v31, 2  ;;  %v2087_v48 = vsel %vm987_vm5, %v2048_v53, %v2086_v39 }
 0xd6e   : > { %v2059_v25 = vsel %vm601_vm0, %v2001_v58, 0.0 }
 0xd6f   : > { %v2060_v32 = vadd.f32 %v2059_v25, %v2058_v35  ;;  %v2055_v0 = vadd.f32 %v2054_v50, %v2053_v31 }
 0xd71   : > { %v2061_v7 = vrot.slane %v2060_v32, 4  ;;  %v2056_v52 = vrot.slane %v2055_v0, 1 }
 0xd73   : > { %v2062_v59 = vadd.f32 %v2061_v7, %v2060_v32  ;;  %v1987_v16 = vpop.permute.xlu1 %1986  ;;  %v2057_v10 = vadd.f32 %v2056_v52, %v2055_v0 }
 0xd74   : > { %v2003_v13 = vmul.f32 %v1987_v16, %v3868_v12 }
 0xd75   : > { %v2063_v29 = vrot.slane %v2062_v59, 2  ;;  %v2088_v43 = vsel %vm989_vm6, %v2057_v10, %v2087_v48 }
 0xd76   : > { %v2068_v37 = vsel %vm601_vm0, %v2003_v13, 0.0 }
 0xd77   : > { %v2069_v4 = vadd.f32 %v2068_v37, %v2067_v8  ;;  %v2064_v5 = vadd.f32 %v2063_v29, %v2062_v59 }
 0xd79   : > { %v2070_v24 = vrot.slane %v2069_v4, 4  ;;  %v2065_v40 = vrot.slane %v2064_v5, 1 }
 0xd7b   : > { %v2071_v12 = vadd.f32 %v2070_v24, %v2069_v4  ;;  %v2066_v34 = vadd.f32 %v2065_v40, %v2064_v5 }
 0xd7d   : > { %v2072_v51 = vrot.slane %v2071_v12, 2  ;;  %v2089_v3 = vsel %vm991_vm7, %v2066_v34, %v2088_v43 }
 0xd7f   : > { %v2073_v62 = vadd.f32 %v2072_v51, %v2071_v12 }
 0xd81   : > { %v2074_v36 = vrot.slane %v2073_v62, 1 }
 0xd83   : > { %v2075_v11 = vadd.f32 %v2074_v36, %v2073_v62 }
 0xd85   : > { %v2090_v22 = vsel %vm993_vm8, %v2075_v11, %v2089_v3 }
 0xd86   : > { %2330 = vmatmul.msk.f32.vlgmr.msrb.gmra.mxu3 %vm601_vm0, %v2090_v22 }
 0xe09   : > { %v2110_v60 = vpop.f32.mrf.mxu3 }
 0xe0a   : > { %v2111_v42 = vadd.f32 %v2599_v45, %v2110_v60 }
 0xe0c   : > { %v2113_v58 = vadd.f32 %v2111_v42, %v3616_v23 }
 0xe0e   : > { %2331 = vmatmul.msk.f32.vlgmr.msra.gmra.mxu1 %vm601_vm0, %v2113_v58 }
 0xe8b   : > { %v2137_v63 = vpop.f32.mrf.mxu1 }
 0xe8c   : > { %v2138_v35 = vadd.f32 %v2484_v54, %v2137_v63 }
 0xe8e   : > { %2140 = vmax.xlane.f32.xlu0 %v2138_v35 }
 0xf01   : > { %v2141_v44 = vpop.xlane.xlu0 %2140 }
 0xf02   : > { %v2142_v25 = vsub.f32 %v2138_v35, %v2141_v44 }
 0xf04   : > { %v2143_v57 = vmul.f32 1.442695, %v2142_v25 }
 0xf06   : > { %2593 = vpow2.f32 %v2143_v57 }
 0xf0c   : > { %v2594_v49 = vpop.eup %2593 }
 0xf0d   : > { %2145 = vadd.xlane.f32.xlu2 %v2594_v49 }
 0xf80   : > { %v2146_v31 = vpop.xlane.xlu2 %2145 }
 0xf81   : > { %2595 = vrcp.f32 %v2146_v31 }
 0xf87   : > { %v2596_v23 = vpop.eup %2595 }
 0xf88   : > { %v2148_v32 = vmul.f32 %v2596_v23, %v2594_v49 }
 0xf8a   : > { %2149 = vst [vmem:[%s553_s29] sm:$0xff] %v2148_v32 }
 0xf8b   : > { %2777 = shalt.err (!%p2774_p9)
}
 0xf8c   : > { %2366 = dma.vmem_to_hbm [thread:$0]  (%p3009_p7), %s2164_s17, 128, %s2166_s22, %s2151_s25  }
 0xf8d PF: > { %s3878_s13 = sld [smem:[#allocation20_spill]]  ;;  %p3880_p12 = scmp.ge.s32.totalorder %s2828_s20, 2 }
 0xf8f   : > { %p2386_p13 = pnand %p3880_p12, %p2952_p6 }
 0xf91   : > { %p2387_p0 = pneg %p2386_p13 }
 0xf93   : > { %s2177_s14 = sand.u32 1, %s3878_s13  }
 0xf94   : > { %s2178_s16 = scalar_lea.sflag [#allocation7], %s2177_s14 }
 0xf95   : > { %2811 = dma.done.wait (%p2387_p0), %s2178_s16, 128  }
 0xf96   : > { %2813 = vsyncadd (%p2387_p0), %s2178_s16, 4294967168  ;;  %s3881_s20 = sld [smem:[#allocation23_spill]]  ;;  %s3884_s17 = smov %s2820_s18 }
 0xf97   : > { %s3882_s12 = sld [smem:[#allocation21_spill]] }
 0xf98   : > { %s3883_s19 = sld [smem:[#allocation24_spill]] }
 0xf9c   : > { %p34_p3 = scmp.ge.s32.totalorder %s3881_s20, 4  }
 0xf9d   : > { %s3885_s18 = smov %s3882_s12 }
 0xf9e   :  { %36 = sbr.rel (!%p34_p3) target bundleno = 15 (0xf), region = 142 }
 0xfa3   :  { %2184 = vsyncpa [#allocation6], 1 }
 0xfa4   :  { %2186 = vsyncpa [#allocation6 + $0x1], 1 }
 0xfa5   :  { %2187 = vsyncpa [#allocation9], 1 }
 0xfa6   :  { %2189 = vsyncpa [#allocation9 + $0x1], 1 }
 0xfa7   :  { %2190 = vsyncpa [#allocation12], 1 }
 0xfa8   :  { %2191 = vsyncpa [#allocation7], 1 }
 0xfa9   :  { %2193 = vsyncpa [#allocation7 + $0x1], 1 }

</bundles_post_ra>
